<compile_context>
chip_gen: v7x
topology: tpu7x:2x2x1
jax: 0.10.0
libtpu: 0.0.40
codegen_flags: <defaults>
</compile_context>

<pallas_src>
import functools

import jax
import jax.numpy as jnp
import numpy as np
from jax.experimental import pallas as pl
from jax.experimental.pallas import tpu as pltpu


def _round_up(x, m):
    return (x + m - 1) // m * m


def _pick_batch_block(batch, cin_pad, hwp_pad):
    """Samples per grid step: enough matmul lanes to amortise per-step
    overhead, bounded so the bf16 im2col slab stays small in VMEM."""
    slab_per_sample = 9 * cin_pad * hwp_pad * 2  # bf16 bytes
    best = 1
    for k in range(1, batch + 1):
        if batch % k or k > 8 or k * slab_per_sample > (4 << 20):
            continue
        best = k
        if k * hwp_pad >= 512:
            break
    return best


def block_kernel(x_ref, w_ref, chan_ref, mod_ref, gidr_ref, mask_ref,
                 o_ref, slab_ref, *, groups, eps, h, w):
    # x_ref:    (K, Cin_pad, Lp_pad)      bf16 zero-padded sample, flat spatial
    # w_ref:    (Cout, 9*Cin_pad)         bf16 conv weight, tap-major (kh,kw,ci)
    # chan_ref: (Cout, 8)                 f32 [bias, gamma, beta, gid, 0...]
    # mod_ref:  (K, Cout, 2)              f32 [scale+1, shift] per sample
    # gidr_ref: (1, Cout)                 f32 group ids (row orientation)
    # mask_ref: (1, HWp_pad)              f32 valid-lane mask (1 on real pixels)
    # o_ref:    (K, Cout, HWp_pad)        channel-major flat output
    # slab_ref: (9*Cin_pad, K*HWp_pad)    bf16 scratch im2col slab
    k = o_ref.shape[0]
    cout = o_ref.shape[1]
    hwp_pad = o_ref.shape[2]
    cin = x_ref.shape[1]
    wp = w + 2
    cpg = cout // groups

    # ---- im2col: 9 static lane-shifted views per sample (aligned writes) ----
    for s in range(k):
        for kh in range(3):
            for kw in range(3):
                tap = kh * 3 + kw
                off = kh * wp + kw
                slab_ref[tap * cin:(tap + 1) * cin,
                         s * hwp_pad:(s + 1) * hwp_pad] = (
                    x_ref[s, :, off:off + hwp_pad])

    # ---- 3x3 conv over all K samples as ONE bf16 MXU matmul (f32 acc) ----
    acc = jnp.dot(w_ref[...], slab_ref[...],
                  preferred_element_type=jnp.float32)   # (Cout, K*HWp_pad) f32

    bias = chan_ref[:, 0:1]                             # (Cout, 1)
    gamma = chan_ref[:, 1:2]
    beta = chan_ref[:, 2:3]
    gid_c = chan_ref[:, 3:4]
    mask = mask_ref[...]                                # (1, HWp_pad)

    # ---- per-sample, per-channel raw stats; conv bias folded analytically ----
    nhw = jnp.float32(h * w)
    stats = []
    for s in range(k):
        seg = acc[:, s * hwp_pad:(s + 1) * hwp_pad]
        segm = seg * mask
        s1 = jnp.sum(segm, axis=1, keepdims=True)                 # sum a
        s2 = jnp.sum(segm * seg, axis=1, keepdims=True)           # sum a^2
        s1b = s1 + bias * nhw                                     # sum (a+b)
        s2b = s2 + 2.0 * bias * s1 + bias * bias * nhw            # sum (a+b)^2
        stats.append(s1b)
        stats.append(s2b)
    ch_stats = jnp.concatenate(stats, axis=1)                     # (Cout, 2K)

    # ---- group aggregation: one dot with a tiny block-diagonal matrix ----
    agg = (gid_c == gidr_ref[...]).astype(jnp.float32)            # (Cout, Cout)
    g_stats = jnp.dot(agg, ch_stats,
                      preferred_element_type=jnp.float32)         # (Cout, 2K)

    n = nhw * jnp.float32(cpg)
    for s in range(k):
        g1 = g_stats[:, 2 * s:2 * s + 1]
        g2 = g_stats[:, 2 * s + 1:2 * s + 2]
        mean = g1 / n
        var = jnp.maximum(g2 / n - mean * mean, 0.0)   # clamp: no NaN rsqrt
        inv = jax.lax.rsqrt(var + eps)

        # fold norm + affine + bias + FiLM into one per-channel FMA
        gi = gamma * inv
        sc1 = mod_ref[s, :, 0:1]                       # scale + 1 (wrapper)
        sh = mod_ref[s, :, 1:2]                        # shift
        a_vec = gi * sc1
        b_vec = ((bias - mean) * gi + beta) * sc1 + sh

        y = acc[:, s * hwp_pad:(s + 1) * hwp_pad] * a_vec + b_vec
        y = y * jax.nn.sigmoid(y)                      # SiLU
        o_ref[s, :, :] = y.astype(o_ref.dtype)


def block_forward(x_nchw, params, scale_shift=None, *, groups=8, eps=1e-5):
    w, b, gamma, beta = params["w"], params["b"], params["gamma"], params["beta"]
    B, Cin, H, W = x_nchw.shape
    Cout = w.shape[0]
    assert Cout % groups == 0, "dim_out must be divisible by groups"

    dt = x_nchw.dtype
    Wp = W + 2
    HWp = H * Wp
    HWp_pad = _round_up(HWp, 128)          # lane-dense (multiple of 128)
    Cin_pad = _round_up(Cin, 16)           # bf16 sublane tile
    Lp_pad = _round_up(2 * Wp + 2 + HWp_pad, 128)   # covers farthest tap read

    K = _pick_batch_block(B, Cin_pad, HWp_pad)

    # zero-pad: channels to Cin_pad, conv halo (rows 1/2, cols 1/1), flatten
    # spatial, extend lane axis so in-kernel tap slices never read OOB.
    xp = jnp.pad(x_nchw, ((0, 0), (0, Cin_pad - Cin), (1, 2), (1, 1)))
    xp = xp.reshape(B, Cin_pad, (H + 3) * Wp)
    xp = jnp.pad(xp, ((0, 0), (0, 0), (0, Lp_pad - (H + 3) * Wp)))
    xp = xp.astype(jnp.bfloat16)

    # PyTorch conv weight (Cout, Cin, 3, 3) -> (Cout, 9*Cin_pad), tap-major
    w_k = jnp.transpose(w, (0, 2, 3, 1))                      # (Cout, 3, 3, Cin)
    w_k = jnp.pad(w_k, ((0, 0), (0, 0), (0, 0), (0, Cin_pad - Cin)))
    w_k = w_k.reshape(Cout, 9 * Cin_pad).astype(jnp.bfloat16)

    # coalesced per-channel table: [bias, gamma, beta, group_id, 0, 0, 0, 0]
    cpg = Cout // groups
    gid = (jnp.arange(Cout, dtype=jnp.int32) // cpg).astype(jnp.float32)
    zeros_c = jnp.zeros((Cout,), jnp.float32)
    chan_tab = jnp.stack(
        [b.astype(jnp.float32), gamma.astype(jnp.float32),
         beta.astype(jnp.float32), gid, zeros_c, zeros_c, zeros_c, zeros_c],
        axis=1)                                               # (Cout, 8)
    gid_r = gid.reshape(1, Cout)

    # per-sample FiLM table: [scale+1, shift] (identity when unused)
    if scale_shift is None:
        mod_tab = jnp.concatenate(
            [jnp.ones((B, Cout, 1), jnp.float32),
             jnp.zeros((B, Cout, 1), jnp.float32)], axis=2)
    else:
        scale, shift = scale_shift
        mod_tab = jnp.stack(
            [scale.reshape(B, Cout).astype(jnp.float32) + 1.0,
             shift.reshape(B, Cout).astype(jnp.float32)], axis=2)  # (B,Cout,2)

    # lane-validity mask over the flat (H, Wp) grid, zero on the 128-pad tail
    col = jnp.arange(HWp_pad, dtype=jnp.int32)
    mask = (((col % Wp) < W) & (col < HWp)).astype(jnp.float32)
    mask = mask.reshape(1, HWp_pad)

    kernel = functools.partial(block_kernel, groups=groups, eps=eps, h=H, w=W)
    out_flat = pl.pallas_call(
        kernel,
        out_shape=jax.ShapeDtypeStruct((B, Cout, HWp_pad), dt),
        grid_spec=pltpu.PrefetchScalarGridSpec(
            num_scalar_prefetch=0,
            grid=(B // K,),
            in_specs=[
                pl.BlockSpec((K, Cin_pad, Lp_pad), lambda g: (g, 0, 0)),   # x
                pl.BlockSpec((Cout, 9 * Cin_pad), lambda g: (0, 0)),       # w
                pl.BlockSpec((Cout, 8), lambda g: (0, 0)),                 # chan
                pl.BlockSpec((K, Cout, 2), lambda g: (g, 0, 0)),           # FiLM
                pl.BlockSpec((1, Cout), lambda g: (0, 0)),                 # gid_r
                pl.BlockSpec((1, HWp_pad), lambda g: (0, 0)),              # mask
            ],
            out_specs=pl.BlockSpec((K, Cout, HWp_pad), lambda g: (g, 0, 0)),
            scratch_shapes=[pltpu.VMEM((9 * Cin_pad, K * HWp_pad),
                                       jnp.bfloat16)],
        ),
        compiler_params=pltpu.CompilerParams(
            dimension_semantics=("parallel",),
            vmem_limit_bytes=32 * 1024 * 1024),
    )(xp, w_k, chan_tab, mod_tab, gid_r, mask)

    # (B, Cout, HWp_pad) -> drop lane pad + garbage columns -> NCHW
    return out_flat[:, :, :HWp].reshape(B, Cout, H, Wp)[:, :, :, :W]


def block_reference(x_nchw, params, scale_shift=None, *, groups=8, eps=1e-5):
    """Plain-JAX reference mirroring the PyTorch module (f32 throughout)."""
    w, b, gamma, beta = params["w"], params["b"], params["gamma"], params["beta"]
    y = jax.lax.conv_general_dilated(
        x_nchw.astype(jnp.float32), w.astype(jnp.float32),
        window_strides=(1, 1), padding="SAME",
        dimension_numbers=("NCHW", "OIHW", "NCHW"),
        precision=jax.lax.Precision.HIGHEST)
    y = y + b[None, :, None, None]
    B, C, H, W = y.shape
    yg = y.reshape(B, groups, C // groups, H, W)
    mean = yg.mean(axis=(2, 3, 4), keepdims=True)
    var = yg.var(axis=(2, 3, 4), keepdims=True)
    yg = (yg - mean) / jnp.sqrt(var + eps)
    y = yg.reshape(B, C, H, W)
    y = y * gamma[None, :, None, None] + beta[None, :, None, None]
    if scale_shift is not None:
        scale, shift = scale_shift
        y = y * (scale + 1.0) + shift
    return y * jax.nn.sigmoid(y)


if __name__ == "__main__":
    B, dim, dim_out, groups = 2, 4, 16, 8
    H = W = 16

    key = jax.random.PRNGKey(0)
    kx, kw, kb, kg, kbe, ks, ksh = jax.random.split(key, 7)

    x = jax.random.normal(kx, (B, dim, H, W), dtype=jnp.float32)
    params = {
        "w": 0.1 * jax.random.normal(kw, (dim_out, dim, 3, 3), dtype=jnp.float32),
        "b": 0.1 * jax.random.normal(kb, (dim_out,), dtype=jnp.float32),
        "gamma": 1.0 + 0.1 * jax.random.normal(kg, (dim_out,), dtype=jnp.float32),
        "beta": 0.1 * jax.random.normal(kbe, (dim_out,), dtype=jnp.float32),
    }
    scale = 0.1 * jax.random.normal(ks, (B, dim_out, 1, 1), dtype=jnp.float32)
    shift = 0.1 * jax.random.normal(ksh, (B, dim_out, 1, 1), dtype=jnp.float32)
    scale_shift = (scale, shift)

    # tolerance: kernel uses bf16 conv operands (f32 accumulation) vs the f32
    # HIGHEST-precision reference.
    out = jax.block_until_ready(block_forward(x, params, scale_shift, groups=groups))
    ref = jax.block_until_ready(block_reference(x, params, scale_shift, groups=groups))
    np.testing.assert_allclose(np.asarray(out), np.asarray(ref),
                               rtol=2e-2, atol=2e-2)

    # also exercise the scale_shift=None path
    out_none = jax.block_until_ready(block_forward(x, params, None, groups=groups))
    ref_none = block_reference(x, params, None, groups=groups)
    np.testing.assert_allclose(np.asarray(out_none), np.asarray(ref_none),
                               rtol=2e-2, atol=2e-2)

    print("KERNEL_OK")
</pallas_src>

<mosaic_0001>
module attributes {stable_mosaic.version = 11 : i64} {
  func.func @block_kernel(%arg0: i32, %arg1: memref<2x16x512xbf16, #tpu.memory_space<vmem>>, %arg2: memref<16x144xbf16, #tpu.memory_space<vmem>>, %arg3: memref<16x8xf32, #tpu.memory_space<vmem>>, %arg4: memref<2x16x2xf32, #tpu.memory_space<vmem>>, %arg5: memref<1x16xf32, #tpu.memory_space<vmem>>, %arg6: memref<1x384xf32, #tpu.memory_space<vmem>>, %arg7: memref<2x16x384xf32, #tpu.memory_space<vmem>>, %arg8: memref<144x768xbf16, #tpu.memory_space<vmem>>) attributes {dimension_semantics = [#tpu.dimension_semantics<parallel>], iteration_bounds = array<i64: 1>, scalar_prefetch = 0 : i64, scratch_operands = 1 : i64, tpu.core_type = #tpu.core_type<tc>, window_params = [{transform_indices = @transform_0, window_bounds = array<i64: 2, 16, 512>}, {pipeline_mode = #tpu.pipeline_mode<synchronous>, transform_indices = @transform_1, window_bounds = array<i64: 16, 144>}, {pipeline_mode = #tpu.pipeline_mode<synchronous>, transform_indices = @transform_2, window_bounds = array<i64: 16, 8>}, {transform_indices = @transform_3, window_bounds = array<i64: 2, 16, 2>}, {pipeline_mode = #tpu.pipeline_mode<synchronous>, transform_indices = @transform_4, window_bounds = array<i64: 1, 16>}, {pipeline_mode = #tpu.pipeline_mode<synchronous>, transform_indices = @transform_5, window_bounds = array<i64: 1, 384>}, {transform_indices = @transform_6, window_bounds = array<i64: 2, 16, 384>}]} {
    %c0 = arith.constant 0 : index
    %c0_0 = arith.constant 0 : index
    %c0_1 = arith.constant 0 : index
    %0 = vector.load %arg1[%c0, %c0_0, %c0_1] : memref<2x16x512xbf16, #tpu.memory_space<vmem>>, vector<1x16x384xbf16>
    %1 = vector.shape_cast %0 : vector<1x16x384xbf16> to vector<16x384xbf16>
    %c0_2 = arith.constant 0 : index
    %c0_3 = arith.constant 0 : index
    %2 = vector.load %arg8[%c0_2, %c0_3] : memref<144x768xbf16, #tpu.memory_space<vmem>>, vector<16x384xbf16>
    tpu.vector_store %arg8[%c0_2, %c0_3], %1 {strides = array<i32>} : memref<144x768xbf16, #tpu.memory_space<vmem>>, vector<16x384xbf16>,
    %c0_4 = arith.constant 0 : index
    %c0_5 = arith.constant 0 : index
    %c1 = arith.constant 1 : index
    %3 = vector.load %arg1[%c0_4, %c0_5, %c1] : memref<2x16x512xbf16, #tpu.memory_space<vmem>>, vector<1x16x384xbf16>
    %4 = vector.shape_cast %3 : vector<1x16x384xbf16> to vector<16x384xbf16>
    %c16 = arith.constant 16 : index
    %c0_6 = arith.constant 0 : index
    %5 = vector.load %arg8[%c16, %c0_6] : memref<144x768xbf16, #tpu.memory_space<vmem>>, vector<16x384xbf16>
    tpu.vector_store %arg8[%c16, %c0_6], %4 {strides = array<i32>} : memref<144x768xbf16, #tpu.memory_space<vmem>>, vector<16x384xbf16>,
    %c0_7 = arith.constant 0 : index
    %c0_8 = arith.constant 0 : index
    %c2 = arith.constant 2 : index
    %6 = vector.load %arg1[%c0_7, %c0_8, %c2] : memref<2x16x512xbf16, #tpu.memory_space<vmem>>, vector<1x16x384xbf16>
    %7 = vector.shape_cast %6 : vector<1x16x384xbf16> to vector<16x384xbf16>
    %c32 = arith.constant 32 : index
    %c0_9 = arith.constant 0 : index
    %8 = vector.load %arg8[%c32, %c0_9] : memref<144x768xbf16, #tpu.memory_space<vmem>>, vector<16x384xbf16>
    tpu.vector_store %arg8[%c32, %c0_9], %7 {strides = array<i32>} : memref<144x768xbf16, #tpu.memory_space<vmem>>, vector<16x384xbf16>,
    %c0_10 = arith.constant 0 : index
    %c0_11 = arith.constant 0 : index
    %c18 = arith.constant 18 : index
    %9 = vector.load %arg1[%c0_10, %c0_11, %c18] : memref<2x16x512xbf16, #tpu.memory_space<vmem>>, vector<1x16x384xbf16>
    %10 = vector.shape_cast %9 : vector<1x16x384xbf16> to vector<16x384xbf16>
    %c48 = arith.constant 48 : index
    %c0_12 = arith.constant 0 : index
    %11 = vector.load %arg8[%c48, %c0_12] : memref<144x768xbf16, #tpu.memory_space<vmem>>, vector<16x384xbf16>
    tpu.vector_store %arg8[%c48, %c0_12], %10 {strides = array<i32>} : memref<144x768xbf16, #tpu.memory_space<vmem>>, vector<16x384xbf16>,
    %c0_13 = arith.constant 0 : index
    %c0_14 = arith.constant 0 : index
    %c19 = arith.constant 19 : index
    %12 = vector.load %arg1[%c0_13, %c0_14, %c19] : memref<2x16x512xbf16, #tpu.memory_space<vmem>>, vector<1x16x384xbf16>
    %13 = vector.shape_cast %12 : vector<1x16x384xbf16> to vector<16x384xbf16>
    %c64 = arith.constant 64 : index
    %c0_15 = arith.constant 0 : index
    %14 = vector.load %arg8[%c64, %c0_15] : memref<144x768xbf16, #tpu.memory_space<vmem>>, vector<16x384xbf16>
    tpu.vector_store %arg8[%c64, %c0_15], %13 {strides = array<i32>} : memref<144x768xbf16, #tpu.memory_space<vmem>>, vector<16x384xbf16>,
    %c0_16 = arith.constant 0 : index
    %c0_17 = arith.constant 0 : index
    %c20 = arith.constant 20 : index
    %15 = vector.load %arg1[%c0_16, %c0_17, %c20] : memref<2x16x512xbf16, #tpu.memory_space<vmem>>, vector<1x16x384xbf16>
    %16 = vector.shape_cast %15 : vector<1x16x384xbf16> to vector<16x384xbf16>
    %c80 = arith.constant 80 : index
    %c0_18 = arith.constant 0 : index
    %17 = vector.load %arg8[%c80, %c0_18] : memref<144x768xbf16, #tpu.memory_space<vmem>>, vector<16x384xbf16>
    tpu.vector_store %arg8[%c80, %c0_18], %16 {strides = array<i32>} : memref<144x768xbf16, #tpu.memory_space<vmem>>, vector<16x384xbf16>,
    %c0_19 = arith.constant 0 : index
    %c0_20 = arith.constant 0 : index
    %c36 = arith.constant 36 : index
    %18 = vector.load %arg1[%c0_19, %c0_20, %c36] : memref<2x16x512xbf16, #tpu.memory_space<vmem>>, vector<1x16x384xbf16>
    %19 = vector.shape_cast %18 : vector<1x16x384xbf16> to vector<16x384xbf16>
    %c96 = arith.constant 96 : index
    %c0_21 = arith.constant 0 : index
    %20 = vector.load %arg8[%c96, %c0_21] : memref<144x768xbf16, #tpu.memory_space<vmem>>, vector<16x384xbf16>
    tpu.vector_store %arg8[%c96, %c0_21], %19 {strides = array<i32>} : memref<144x768xbf16, #tpu.memory_space<vmem>>, vector<16x384xbf16>,
    %c0_22 = arith.constant 0 : index
    %c0_23 = arith.constant 0 : index
    %c37 = arith.constant 37 : index
    %21 = vector.load %arg1[%c0_22, %c0_23, %c37] : memref<2x16x512xbf16, #tpu.memory_space<vmem>>, vector<1x16x384xbf16>
    %22 = vector.shape_cast %21 : vector<1x16x384xbf16> to vector<16x384xbf16>
    %c112 = arith.constant 112 : index
    %c0_24 = arith.constant 0 : index
    %23 = vector.load %arg8[%c112, %c0_24] : memref<144x768xbf16, #tpu.memory_space<vmem>>, vector<16x384xbf16>
    tpu.vector_store %arg8[%c112, %c0_24], %22 {strides = array<i32>} : memref<144x768xbf16, #tpu.memory_space<vmem>>, vector<16x384xbf16>,
    %c0_25 = arith.constant 0 : index
    %c0_26 = arith.constant 0 : index
    %c38 = arith.constant 38 : index
    %24 = vector.load %arg1[%c0_25, %c0_26, %c38] : memref<2x16x512xbf16, #tpu.memory_space<vmem>>, vector<1x16x384xbf16>
    %25 = vector.shape_cast %24 : vector<1x16x384xbf16> to vector<16x384xbf16>
    %c128 = arith.constant 128 : index
    %c0_27 = arith.constant 0 : index
    %26 = vector.load %arg8[%c128, %c0_27] : memref<144x768xbf16, #tpu.memory_space<vmem>>, vector<16x384xbf16>
    tpu.vector_store %arg8[%c128, %c0_27], %25 {strides = array<i32>} : memref<144x768xbf16, #tpu.memory_space<vmem>>, vector<16x384xbf16>,
    %c1_28 = arith.constant 1 : index
    %c0_29 = arith.constant 0 : index
    %c0_30 = arith.constant 0 : index
    %27 = vector.load %arg1[%c1_28, %c0_29, %c0_30] : memref<2x16x512xbf16, #tpu.memory_space<vmem>>, vector<1x16x384xbf16>
    %28 = vector.shape_cast %27 : vector<1x16x384xbf16> to vector<16x384xbf16>
    %c0_31 = arith.constant 0 : index
    %c384 = arith.constant 384 : index
    %29 = vector.load %arg8[%c0_31, %c384] : memref<144x768xbf16, #tpu.memory_space<vmem>>, vector<16x384xbf16>
    tpu.vector_store %arg8[%c0_31, %c384], %28 {strides = array<i32>} : memref<144x768xbf16, #tpu.memory_space<vmem>>, vector<16x384xbf16>,
    %c1_32 = arith.constant 1 : index
    %c0_33 = arith.constant 0 : index
    %c1_34 = arith.constant 1 : index
    %30 = vector.load %arg1[%c1_32, %c0_33, %c1_34] : memref<2x16x512xbf16, #tpu.memory_space<vmem>>, vector<1x16x384xbf16>
    %31 = vector.shape_cast %30 : vector<1x16x384xbf16> to vector<16x384xbf16>
    %c16_35 = arith.constant 16 : index
    %c384_36 = arith.constant 384 : index
    %32 = vector.load %arg8[%c16_35, %c384_36] : memref<144x768xbf16, #tpu.memory_space<vmem>>, vector<16x384xbf16>
    tpu.vector_store %arg8[%c16_35, %c384_36], %31 {strides = array<i32>} : memref<144x768xbf16, #tpu.memory_space<vmem>>, vector<16x384xbf16>,
    %c1_37 = arith.constant 1 : index
    %c0_38 = arith.constant 0 : index
    %c2_39 = arith.constant 2 : index
    %33 = vector.load %arg1[%c1_37, %c0_38, %c2_39] : memref<2x16x512xbf16, #tpu.memory_space<vmem>>, vector<1x16x384xbf16>
    %34 = vector.shape_cast %33 : vector<1x16x384xbf16> to vector<16x384xbf16>
    %c32_40 = arith.constant 32 : index
    %c384_41 = arith.constant 384 : index
    %35 = vector.load %arg8[%c32_40, %c384_41] : memref<144x768xbf16, #tpu.memory_space<vmem>>, vector<16x384xbf16>
    tpu.vector_store %arg8[%c32_40, %c384_41], %34 {strides = array<i32>} : memref<144x768xbf16, #tpu.memory_space<vmem>>, vector<16x384xbf16>,
    %c1_42 = arith.constant 1 : index
    %c0_43 = arith.constant 0 : index
    %c18_44 = arith.constant 18 : index
    %36 = vector.load %arg1[%c1_42, %c0_43, %c18_44] : memref<2x16x512xbf16, #tpu.memory_space<vmem>>, vector<1x16x384xbf16>
    %37 = vector.shape_cast %36 : vector<1x16x384xbf16> to vector<16x384xbf16>
    %c48_45 = arith.constant 48 : index
    %c384_46 = arith.constant 384 : index
    %38 = vector.load %arg8[%c48_45, %c384_46] : memref<144x768xbf16, #tpu.memory_space<vmem>>, vector<16x384xbf16>
    tpu.vector_store %arg8[%c48_45, %c384_46], %37 {strides = array<i32>} : memref<144x768xbf16, #tpu.memory_space<vmem>>, vector<16x384xbf16>,
    %c1_47 = arith.constant 1 : index
    %c0_48 = arith.constant 0 : index
    %c19_49 = arith.constant 19 : index
    %39 = vector.load %arg1[%c1_47, %c0_48, %c19_49] : memref<2x16x512xbf16, #tpu.memory_space<vmem>>, vector<1x16x384xbf16>
    %40 = vector.shape_cast %39 : vector<1x16x384xbf16> to vector<16x384xbf16>
    %c64_50 = arith.constant 64 : index
    %c384_51 = arith.constant 384 : index
    %41 = vector.load %arg8[%c64_50, %c384_51] : memref<144x768xbf16, #tpu.memory_space<vmem>>, vector<16x384xbf16>
    tpu.vector_store %arg8[%c64_50, %c384_51], %40 {strides = array<i32>} : memref<144x768xbf16, #tpu.memory_space<vmem>>, vector<16x384xbf16>,
    %c1_52 = arith.constant 1 : index
    %c0_53 = arith.constant 0 : index
    %c20_54 = arith.constant 20 : index
    %42 = vector.load %arg1[%c1_52, %c0_53, %c20_54] : memref<2x16x512xbf16, #tpu.memory_space<vmem>>, vector<1x16x384xbf16>
    %43 = vector.shape_cast %42 : vector<1x16x384xbf16> to vector<16x384xbf16>
    %c80_55 = arith.constant 80 : index
    %c384_56 = arith.constant 384 : index
    %44 = vector.load %arg8[%c80_55, %c384_56] : memref<144x768xbf16, #tpu.memory_space<vmem>>, vector<16x384xbf16>
    tpu.vector_store %arg8[%c80_55, %c384_56], %43 {strides = array<i32>} : memref<144x768xbf16, #tpu.memory_space<vmem>>, vector<16x384xbf16>,
    %c1_57 = arith.constant 1 : index
    %c0_58 = arith.constant 0 : index
    %c36_59 = arith.constant 36 : index
    %45 = vector.load %arg1[%c1_57, %c0_58, %c36_59] : memref<2x16x512xbf16, #tpu.memory_space<vmem>>, vector<1x16x384xbf16>
    %46 = vector.shape_cast %45 : vector<1x16x384xbf16> to vector<16x384xbf16>
    %c96_60 = arith.constant 96 : index
    %c384_61 = arith.constant 384 : index
    %47 = vector.load %arg8[%c96_60, %c384_61] : memref<144x768xbf16, #tpu.memory_space<vmem>>, vector<16x384xbf16>
    tpu.vector_store %arg8[%c96_60, %c384_61], %46 {strides = array<i32>} : memref<144x768xbf16, #tpu.memory_space<vmem>>, vector<16x384xbf16>,
    %c1_62 = arith.constant 1 : index
    %c0_63 = arith.constant 0 : index
    %c37_64 = arith.constant 37 : index
    %48 = vector.load %arg1[%c1_62, %c0_63, %c37_64] : memref<2x16x512xbf16, #tpu.memory_space<vmem>>, vector<1x16x384xbf16>
    %49 = vector.shape_cast %48 : vector<1x16x384xbf16> to vector<16x384xbf16>
    %c112_65 = arith.constant 112 : index
    %c384_66 = arith.constant 384 : index
    %50 = vector.load %arg8[%c112_65, %c384_66] : memref<144x768xbf16, #tpu.memory_space<vmem>>, vector<16x384xbf16>
    tpu.vector_store %arg8[%c112_65, %c384_66], %49 {strides = array<i32>} : memref<144x768xbf16, #tpu.memory_space<vmem>>, vector<16x384xbf16>,
    %c1_67 = arith.constant 1 : index
    %c0_68 = arith.constant 0 : index
    %c38_69 = arith.constant 38 : index
    %51 = vector.load %arg1[%c1_67, %c0_68, %c38_69] : memref<2x16x512xbf16, #tpu.memory_space<vmem>>, vector<1x16x384xbf16>
    %52 = vector.shape_cast %51 : vector<1x16x384xbf16> to vector<16x384xbf16>
    %c128_70 = arith.constant 128 : index
    %c384_71 = arith.constant 384 : index
    %53 = vector.load %arg8[%c128_70, %c384_71] : memref<144x768xbf16, #tpu.memory_space<vmem>>, vector<16x384xbf16>
    tpu.vector_store %arg8[%c128_70, %c384_71], %52 {strides = array<i32>} : memref<144x768xbf16, #tpu.memory_space<vmem>>, vector<16x384xbf16>,
    %c0_72 = arith.constant 0 : index
    %c0_73 = arith.constant 0 : index
    %54 = vector.load %arg2[%c0_72, %c0_73] : memref<16x144xbf16, #tpu.memory_space<vmem>>, vector<16x144xbf16>
    %c0_74 = arith.constant 0 : index
    %c0_75 = arith.constant 0 : index
    %55 = vector.load %arg8[%c0_74, %c0_75] : memref<144x768xbf16, #tpu.memory_space<vmem>>, vector<144x768xbf16>
    %cst = arith.constant dense<0.000000e+00> : vector<16x768xf32>
    %56 = tpu.matmul %54, %55, %cst {dimension_numbers = #tpu.dot_dimension_numbers<[1], [0], [0], [1], [0, 0, 1, 1], [], []>} : vector<16x144xbf16>, vector<144x768xbf16>, vector<16x768xf32> -> vector<16x768xf32>
    %c0_76 = arith.constant 0 : index
    %c0_77 = arith.constant 0 : index
    %57 = vector.load %arg3[%c0_76, %c0_77] : memref<16x8xf32, #tpu.memory_space<vmem>>, vector<16x1xf32>
    %c0_78 = arith.constant 0 : index
    %c1_79 = arith.constant 1 : index
    %58 = vector.load %arg3[%c0_78, %c1_79] : memref<16x8xf32, #tpu.memory_space<vmem>>, vector<16x1xf32>
    %c0_80 = arith.constant 0 : index
    %c2_81 = arith.constant 2 : index
    %59 = vector.load %arg3[%c0_80, %c2_81] : memref<16x8xf32, #tpu.memory_space<vmem>>, vector<16x1xf32>
    %c0_82 = arith.constant 0 : index
    %c3 = arith.constant 3 : index
    %60 = vector.load %arg3[%c0_82, %c3] : memref<16x8xf32, #tpu.memory_space<vmem>>, vector<16x1xf32>
    %c0_83 = arith.constant 0 : index
    %c0_84 = arith.constant 0 : index
    %61 = vector.load %arg6[%c0_83, %c0_84] : memref<1x384xf32, #tpu.memory_space<vmem>>, vector<1x384xf32>
    %62 = vector.extract_strided_slice %56 {offsets = [0, 0], sizes = [16, 384], strides = [1, 1]} : vector<16x768xf32> to vector<16x384xf32>
    %63 = vector.broadcast %61 : vector<1x384xf32> to vector<16x384xf32>
    %64 = arith.mulf %62, %63 : vector<16x384xf32>
    %cst_85 = arith.constant dense<0.000000e+00> : vector<16xf32>
    %65 = vector.multi_reduction <add>, %64, %cst_85 [1] : vector<16x384xf32> to vector<16xf32>
    %66 = vector.shape_cast %65 : vector<16xf32> to vector<16x1xf32>
    %67 = arith.mulf %64, %62 : vector<16x384xf32>
    %cst_86 = arith.constant dense<0.000000e+00> : vector<16xf32>
    %68 = vector.multi_reduction <add>, %67, %cst_86 [1] : vector<16x384xf32> to vector<16xf32>
    %69 = vector.shape_cast %68 : vector<16xf32> to vector<16x1xf32>
    %cst_87 = arith.constant 2.560000e+02 : f32
    %70 = vector.broadcast %cst_87 : f32 to vector<16x1xf32>
    %71 = arith.mulf %57, %70 : vector<16x1xf32>
    %72 = arith.addf %66, %71 : vector<16x1xf32>
    %cst_88 = arith.constant 2.000000e+00 : f32
    %73 = vector.broadcast %cst_88 : f32 to vector<16x1xf32>
    %74 = arith.mulf %73, %57 : vector<16x1xf32>
    %75 = arith.mulf %74, %66 : vector<16x1xf32>
    %76 = arith.addf %69, %75 : vector<16x1xf32>
    %77 = arith.mulf %57, %57 : vector<16x1xf32>
    %cst_89 = arith.constant 2.560000e+02 : f32
    %78 = vector.broadcast %cst_89 : f32 to vector<16x1xf32>
    %79 = arith.mulf %77, %78 : vector<16x1xf32>
    %80 = arith.addf %76, %79 : vector<16x1xf32>
    %81 = vector.extract_strided_slice %56 {offsets = [0, 384], sizes = [16, 384], strides = [1, 1]} : vector<16x768xf32> to vector<16x384xf32>
    %82 = vector.broadcast %61 : vector<1x384xf32> to vector<16x384xf32>
    %83 = arith.mulf %81, %82 : vector<16x384xf32>
    %cst_90 = arith.constant dense<0.000000e+00> : vector<16xf32>
    %84 = vector.multi_reduction <add>, %83, %cst_90 [1] : vector<16x384xf32> to vector<16xf32>
    %85 = vector.shape_cast %84 : vector<16xf32> to vector<16x1xf32>
    %86 = arith.mulf %83, %81 : vector<16x384xf32>
    %cst_91 = arith.constant dense<0.000000e+00> : vector<16xf32>
    %87 = vector.multi_reduction <add>, %86, %cst_91 [1] : vector<16x384xf32> to vector<16xf32>
    %88 = vector.shape_cast %87 : vector<16xf32> to vector<16x1xf32>
    %cst_92 = arith.constant 2.560000e+02 : f32
    %89 = vector.broadcast %cst_92 : f32 to vector<16x1xf32>
    %90 = arith.mulf %57, %89 : vector<16x1xf32>
    %91 = arith.addf %85, %90 : vector<16x1xf32>
    %cst_93 = arith.constant 2.000000e+00 : f32
    %92 = vector.broadcast %cst_93 : f32 to vector<16x1xf32>
    %93 = arith.mulf %92, %57 : vector<16x1xf32>
    %94 = arith.mulf %93, %85 : vector<16x1xf32>
    %95 = arith.addf %88, %94 : vector<16x1xf32>
    %96 = arith.mulf %57, %57 : vector<16x1xf32>
    %cst_94 = arith.constant 2.560000e+02 : f32
    %97 = vector.broadcast %cst_94 : f32 to vector<16x1xf32>
    %98 = arith.mulf %96, %97 : vector<16x1xf32>
    %99 = arith.addf %95, %98 : vector<16x1xf32>
    %100 = tpu.concatenate %72, %80, %91, %99 in 1 : vector<16x1xf32>, vector<16x1xf32>, vector<16x1xf32>, vector<16x1xf32> -> vector<16x4xf32>
    %c0_95 = arith.constant 0 : index
    %c0_96 = arith.constant 0 : index
    %101 = vector.load %arg5[%c0_95, %c0_96] : memref<1x16xf32, #tpu.memory_space<vmem>>, vector<1x16xf32>
    %102 = vector.broadcast %60 : vector<16x1xf32> to vector<16x16xf32>
    %103 = vector.broadcast %101 : vector<1x16xf32> to vector<16x16xf32>
    %104 = arith.cmpf oeq, %102, %103 : vector<16x16xf32>
    %105 = arith.extui %104 : vector<16x16xi1> to vector<16x16xi32>
    %106 = arith.sitofp %105 : vector<16x16xi32> to vector<16x16xf32>
    %cst_97 = arith.constant dense<0.000000e+00> : vector<16x4xf32>
    %107 = tpu.matmul %106, %100, %cst_97 {dimension_numbers = #tpu.dot_dimension_numbers<[1], [0], [0], [1], [0, 0, 1, 1], [], []>} : vector<16x16xf32>, vector<16x4xf32>, vector<16x4xf32> -> vector<16x4xf32>
    %cst_98 = arith.constant 2.560000e+02 : f32
    %cst_99 = arith.constant 2.000000e+00 : f32
    %108 = arith.mulf %cst_98, %cst_99 : f32
    %109 = vector.extract_strided_slice %107 {offsets = [0, 0], sizes = [16, 1], strides = [1, 1]} : vector<16x4xf32> to vector<16x1xf32>
    %110 = vector.extract_strided_slice %107 {offsets = [0, 1], sizes = [16, 1], strides = [1, 1]} : vector<16x4xf32> to vector<16x1xf32>
    %111 = vector.broadcast %108 : f32 to vector<16x1xf32>
    %112 = arith.divf %109, %111 : vector<16x1xf32>
    %113 = vector.broadcast %108 : f32 to vector<16x1xf32>
    %114 = arith.divf %110, %113 : vector<16x1xf32>
    %115 = arith.mulf %112, %112 : vector<16x1xf32>
    %116 = arith.subf %114, %115 : vector<16x1xf32>
    %cst_100 = arith.constant 0.000000e+00 : f32
    %117 = vector.broadcast %cst_100 : f32 to vector<16x1xf32>
    %118 = arith.maximumf %116, %117 : vector<16x1xf32>
    %cst_101 = arith.constant 9.99999974E-6 : f32
    %119 = vector.broadcast %cst_101 : f32 to vector<16x1xf32>
    %120 = arith.addf %118, %119 : vector<16x1xf32>
    %121 = math.rsqrt %120 : vector<16x1xf32>
    %122 = arith.mulf %58, %121 : vector<16x1xf32>
    %c0_102 = arith.constant 0 : index
    %c0_103 = arith.constant 0 : index
    %c0_104 = arith.constant 0 : index
    %123 = vector.load %arg4[%c0_102, %c0_103, %c0_104] : memref<2x16x2xf32, #tpu.memory_space<vmem>>, vector<1x16x1xf32>
    %124 = vector.shape_cast %123 : vector<1x16x1xf32> to vector<16x1xf32>
    %c0_105 = arith.constant 0 : index
    %c0_106 = arith.constant 0 : index
    %c1_107 = arith.constant 1 : index
    %125 = vector.load %arg4[%c0_105, %c0_106, %c1_107] : memref<2x16x2xf32, #tpu.memory_space<vmem>>, vector<1x16x1xf32>
    %126 = vector.shape_cast %125 : vector<1x16x1xf32> to vector<16x1xf32>
    %127 = arith.mulf %122, %124 : vector<16x1xf32>
    %128 = arith.subf %57, %112 : vector<16x1xf32>
    %129 = arith.mulf %128, %122 : vector<16x1xf32>
    %130 = arith.addf %129, %59 : vector<16x1xf32>
    %131 = arith.mulf %130, %124 : vector<16x1xf32>
    %132 = arith.addf %131, %126 : vector<16x1xf32>
    %133 = vector.extract_strided_slice %56 {offsets = [0, 0], sizes = [16, 384], strides = [1, 1]} : vector<16x768xf32> to vector<16x384xf32>
    %134 = vector.broadcast %127 : vector<16x1xf32> to vector<16x384xf32>
    %135 = arith.mulf %133, %134 : vector<16x384xf32>
    %136 = vector.broadcast %132 : vector<16x1xf32> to vector<16x384xf32>
    %137 = arith.addf %135, %136 : vector<16x384xf32>
    %138 = arith.negf %137 : vector<16x384xf32>
    %139 = math.exp %138 : vector<16x384xf32>
    %cst_108 = arith.constant 1.000000e+00 : f32
    %140 = vector.broadcast %cst_108 : f32 to vector<16x384xf32>
    %141 = arith.addf %140, %139 : vector<16x384xf32>
    %142 = arith.divf %140, %141 : vector<16x384xf32>
    %143 = arith.mulf %137, %142 : vector<16x384xf32>
    %c0_109 = arith.constant 0 : index
    %c0_110 = arith.constant 0 : index
    %c0_111 = arith.constant 0 : index
    %144 = vector.load %arg7[%c0_109, %c0_110, %c0_111] : memref<2x16x384xf32, #tpu.memory_space<vmem>>, vector<1x16x384xf32>
    %145 = vector.shape_cast %144 : vector<1x16x384xf32> to vector<16x384xf32>
    %146 = vector.shape_cast %143 : vector<16x384xf32> to vector<1x16x384xf32>
    tpu.vector_store %arg7[%c0_109, %c0_110, %c0_111], %146 {strides = array<i32>} : memref<2x16x384xf32, #tpu.memory_space<vmem>>, vector<1x16x384xf32>,
    %147 = vector.extract_strided_slice %107 {offsets = [0, 2], sizes = [16, 1], strides = [1, 1]} : vector<16x4xf32> to vector<16x1xf32>
    %148 = vector.extract_strided_slice %107 {offsets = [0, 3], sizes = [16, 1], strides = [1, 1]} : vector<16x4xf32> to vector<16x1xf32>
    %149 = vector.broadcast %108 : f32 to vector<16x1xf32>
    %150 = arith.divf %147, %149 : vector<16x1xf32>
    %151 = vector.broadcast %108 : f32 to vector<16x1xf32>
    %152 = arith.divf %148, %151 : vector<16x1xf32>
    %153 = arith.mulf %150, %150 : vector<16x1xf32>
    %154 = arith.subf %152, %153 : vector<16x1xf32>
    %cst_112 = arith.constant 0.000000e+00 : f32
    %155 = vector.broadcast %cst_112 : f32 to vector<16x1xf32>
    %156 = arith.maximumf %154, %155 : vector<16x1xf32>
    %cst_113 = arith.constant 9.99999974E-6 : f32
    %157 = vector.broadcast %cst_113 : f32 to vector<16x1xf32>
    %158 = arith.addf %156, %157 : vector<16x1xf32>
    %159 = math.rsqrt %158 : vector<16x1xf32>
    %160 = arith.mulf %58, %159 : vector<16x1xf32>
    %c1_114 = arith.constant 1 : index
    %c0_115 = arith.constant 0 : index
    %c0_116 = arith.constant 0 : index
    %161 = vector.load %arg4[%c1_114, %c0_115, %c0_116] : memref<2x16x2xf32, #tpu.memory_space<vmem>>, vector<1x16x1xf32>
    %162 = vector.shape_cast %161 : vector<1x16x1xf32> to vector<16x1xf32>
    %c1_117 = arith.constant 1 : index
    %c0_118 = arith.constant 0 : index
    %c1_119 = arith.constant 1 : index
    %163 = vector.load %arg4[%c1_117, %c0_118, %c1_119] : memref<2x16x2xf32, #tpu.memory_space<vmem>>, vector<1x16x1xf32>
    %164 = vector.shape_cast %163 : vector<1x16x1xf32> to vector<16x1xf32>
    %165 = arith.mulf %160, %162 : vector<16x1xf32>
    %166 = arith.subf %57, %150 : vector<16x1xf32>
    %167 = arith.mulf %166, %160 : vector<16x1xf32>
    %168 = arith.addf %167, %59 : vector<16x1xf32>
    %169 = arith.mulf %168, %162 : vector<16x1xf32>
    %170 = arith.addf %169, %164 : vector<16x1xf32>
    %171 = vector.extract_strided_slice %56 {offsets = [0, 384], sizes = [16, 384], strides = [1, 1]} : vector<16x768xf32> to vector<16x384xf32>
    %172 = vector.broadcast %165 : vector<16x1xf32> to vector<16x384xf32>
    %173 = arith.mulf %171, %172 : vector<16x384xf32>
    %174 = vector.broadcast %170 : vector<16x1xf32> to vector<16x384xf32>
    %175 = arith.addf %173, %174 : vector<16x384xf32>
    %176 = arith.negf %175 : vector<16x384xf32>
    %177 = math.exp %176 : vector<16x384xf32>
    %cst_120 = arith.constant 1.000000e+00 : f32
    %178 = vector.broadcast %cst_120 : f32 to vector<16x384xf32>
    %179 = arith.addf %178, %177 : vector<16x384xf32>
    %180 = arith.divf %178, %179 : vector<16x384xf32>
    %181 = arith.mulf %175, %180 : vector<16x384xf32>
    %c1_121 = arith.constant 1 : index
    %c0_122 = arith.constant 0 : index
    %c0_123 = arith.constant 0 : index
    %182 = vector.load %arg7[%c1_121, %c0_122, %c0_123] : memref<2x16x384xf32, #tpu.memory_space<vmem>>, vector<1x16x384xf32>
    %183 = vector.shape_cast %182 : vector<1x16x384xf32> to vector<16x384xf32>
    %184 = vector.shape_cast %181 : vector<16x384xf32> to vector<1x16x384xf32>
    tpu.vector_store %arg7[%c1_121, %c0_122, %c0_123], %184 {strides = array<i32>} : memref<2x16x384xf32, #tpu.memory_space<vmem>>, vector<1x16x384xf32>,
    return
  }
  func.func @transform_0(%arg0: i32) -> (i32, i32, i32) {
    %c0_i32 = arith.constant 0 : i32
    %c0_i32_0 = arith.constant 0 : i32
    %c0_i32_1 = arith.constant 0 : i32
    return %arg0, %c0_i32, %c0_i32_0 : i32, i32, i32
  }
  func.func @transform_1(%arg0: i32) -> (i32, i32) {
    %c0_i32 = arith.constant 0 : i32
    %c0_i32_0 = arith.constant 0 : i32
    %c0_i32_1 = arith.constant 0 : i32
    return %c0_i32, %c0_i32_0 : i32, i32
  }
  func.func @transform_2(%arg0: i32) -> (i32, i32) {
    %c0_i32 = arith.constant 0 : i32
    %c0_i32_0 = arith.constant 0 : i32
    %c0_i32_1 = arith.constant 0 : i32
    return %c0_i32, %c0_i32_0 : i32, i32
  }
  func.func @transform_3(%arg0: i32) -> (i32, i32, i32) {
    %c0_i32 = arith.constant 0 : i32
    %c0_i32_0 = arith.constant 0 : i32
    %c0_i32_1 = arith.constant 0 : i32
    return %arg0, %c0_i32, %c0_i32_0 : i32, i32, i32
  }
  func.func @transform_4(%arg0: i32) -> (i32, i32) {
    %c0_i32 = arith.constant 0 : i32
    %c0_i32_0 = arith.constant 0 : i32
    %c0_i32_1 = arith.constant 0 : i32
    return %c0_i32, %c0_i32_0 : i32, i32
  }
  func.func @transform_5(%arg0: i32) -> (i32, i32) {
    %c0_i32 = arith.constant 0 : i32
    %c0_i32_0 = arith.constant 0 : i32
    %c0_i32_1 = arith.constant 0 : i32
    return %c0_i32, %c0_i32_0 : i32, i32
  }
  func.func @transform_6(%arg0: i32) -> (i32, i32, i32) {
    %c0_i32 = arith.constant 0 : i32
    %c0_i32_0 = arith.constant 0 : i32
    %c0_i32_1 = arith.constant 0 : i32
    return %arg0, %c0_i32, %c0_i32_0 : i32, i32, i32
  }
}

</mosaic_0001>

<bundles_post_ra>
// kernel: tpu_custom_call.1
= control target key start
LH: loop header
LB: loop body
LE: loop exit
PB: predicated region body
PF: predicated region fallthrough
CT: control target
= control target key end

     0   :  { %11 = vsyncpa [#allocation4], 0  ;;  %s2143_s0 = inlined_call_operand.hbm [shape: bf16[2,16,512], index: 0, kind: input, shape index: {}]   ;;  %s2144_s1 = inlined_call_operand.vmem [shape: bf16[16,144], index: 1, kind: input, shape index: {}]   ;;  %s2145_s2 = inlined_call_operand.vmem [shape: f32[16,8], index: 2, kind: input, shape index: {}]   ;;  %s2146_s3 = inlined_call_operand.vmem [shape: f32[2,16,2], index: 3, kind: input, shape index: {}]   ;;  %s2147_s4 = inlined_call_operand.vmem [shape: f32[1,16], index: 4, kind: input, shape index: {}]   ;;  %s2148_s5 = inlined_call_operand.vmem [shape: f32[1,384], index: 5, kind: input, shape index: {}]   ;;  %s2149_s6 = inlined_call_operand.hbm [shape: f32[2,16,384], index: 6, kind: output, shape index: {}]  }
   0x1   :  { %12 = vsyncpa [#allocation5], 0  ;;  %s1685_s21 = smov [#allocation3]   ;;  %s1637_s25 = scalar_lea.hbm %s2143_s0, 1024 }
   0x2   :  { %s18_s22 = sshll.u32 %s1685_s21, 4  ;;  %p1638_p0 = scmp.ne.s32.totalorder %s2143_s0, %s1637_s25  ;;  %s19_s22 = int_to_ptr.vmem [resolvable:$true] %s18_s22 }
   0x3   :  { %p1641_p1 = scmp.lt.u32.totalorder %s1637_s25, %s2143_s0 }
   0x5   :  { %p1643_p2 = pnand %p1641_p1, %p1638_p0 }
   0x7   :  { %1646 = shalt.err (!%p1643_p2)
}
   0x8   :  { %s1647_s30 = scalar_lea.vmem %s19_s22, 1024  ;;  %p1652_p4 = scmp.lt.s32.totalorder %s19_s22, %s19_s22 }
   0x9   :  { %p1648_p3 = scmp.ne.s32.totalorder %s19_s22, %s1647_s30  ;;  %p1653_p5 = scmp.lt.s32.totalorder %s1647_s30, %s1647_s30 }
   0xb   :  { %p1654_p6 = por %p1653_p5, %p1652_p4 }
   0xd   :  { %p1655_p7 = pnand %p1654_p6, %p1648_p3 }
   0xf   :  { %1658 = shalt.err (!%p1655_p7)
}
  0x10   :  { %s1686_s7 = smov 256   ;;  %s1687_s8 = smov 16  }
  0x11   :  { %24 = dma.hbm_to_vmem [thread:$0]  %s2143_s0, 1024, %s19_s22, [#allocation4], %s1686_s7, %s1686_s7, %s1687_s8  }
  0x12   :  { %1681 = dma.done.wait [#allocation4], 1024  }
  0x13   :  { %1682 = vsyncadd [#allocation4], 4294966272  ;;  %v1568_v0 = vld [vmem:[#allocation3 + $0x4] ss:$16 sps:$4 sm:$0xff]   ;;  %v1570_v1 = vld [vmem:[#allocation3] ss:$16 sps:$4 sm:$0xff]  }
  0x14   :  { %s1688_s11 = smov 127   ;;  %v1571_v2 = vld [vmem:[#allocation3 + $0x8] ss:$16 sps:$4 sm:$0xff]   ;;  %755 = vmatprep.subr.bf16.mxu0 %v1568_v0  ;;  %v1755_v3 = vld [vmem:[#allocation3 + $0x20] ss:$16 sps:$4 sm:$0xff]   ;;  %s1689_s12 = smov 126  }
  0x15   :  { %84 = vrot.lane.b32.xlu0 %v1568_v0, %s1688_s11  ;;  %82 = vrot.lane.b32.xlu1 %v1570_v1, %s1688_s11  ;;  %s1690_s0 = smov 110   ;;  %s1691_s13 = smov 109   ;;  %v1580_v4 = vld [vmem:[#allocation3 + $0x8] ss:$16 sps:$4 sm:$0xff]   ;;  %v1779_v5 = vld [vmem:[%s2144_s1 + $0x4] ss:$8 sps:$4 sm:$0xff]  }
  0x16   :  { %756 = vmatpush1.bf16.msra.mxu0 %v1570_v1  ;;  %798 = vmatprep.subr.bf16.mxu1 %v1755_v3  ;;  %s1692_s14 = smov 108   ;;  %s1693_s15 = smov 92   ;;  %vm751_vm0 = vcmask 130048   ;;  %v1789_v6 = vld [vmem:[#allocation3 + $0x24] ss:$16 sps:$4 sm:$0xff]   ;;  %vm90_vm1 = vcmask 1039360  }
  0x17   :  { %s1694_s16 = smov 91   ;;  %799 = vmatpush1.bf16.msra.mxu1 %v1580_v4  ;;  %s1695_s19 = smov 90   ;;  %1490 = vmatprep.mubr.msk.bf16.mxu0 %vm751_vm0, %v1779_v5  ;;  %v1576_v7 = vld [vmem:[#allocation3 + $0xc] ss:$16 sps:$4 sm:$0xff]   ;;  %v1577_v8 = vld [vmem:[#allocation3 + $0x28] ss:$16 sps:$4 sm:$0xff]  }
  0x18   :  { %1491 = vmatprep.mubr.msk.bf16.mxu1 %vm751_vm0, %v1779_v5  ;;  %v1579_v9 = vld [vmem:[#allocation3 + $0x2c] ss:$16 sps:$4 sm:$0xff]   ;;  %vm128_vm2 = vcmask 1031168   ;;  %vm166_vm3 = vcmask 900096   ;;  %vm204_vm4 = vcmask 891904   ;;  %vm242_vm5 = vcmask 883712  }
  0x19   :  { %86 = vrot.lane.b32.xlu0 %v1571_v2, %s1688_s11  ;;  %122 = vrot.lane.b32.xlu1 %v1568_v0, %s1689_s12  ;;  %vm280_vm6 = vcmask 752640   ;;  %vm318_vm7 = vcmask 744448   ;;  %vm356_vm8 = vcmask 736256   ;;  %v1583_v47 = vld [vmem:[#allocation3 + $0x28] ss:$16 sps:$4 sm:$0xff]   ;;  %s1697_s27 = smov 1  }
  0x1a   :  { %v1890_v51 = vld [vmem:[%s2144_s1] ss:$8 sps:$4 sm:$0xff]   ;;  %s1698_s28 = smov 2   ;;  %vm1007_vm11 = vcmask 7168   ;;  %vm1010_vm12 = vcmask 15360   ;;  %vm1013_vm13 = vcmask 23552  }
  0x1d   :  { %124 = vrot.lane.b32.xlu0 %v1571_v2, %s1689_s12  ;;  %120 = vrot.lane.b32.xlu1 %v1570_v1, %s1689_s12 }
  0x21   :  { %160 = vrot.lane.b32.xlu0 %v1568_v0, %s1690_s0  ;;  %162 = vrot.lane.b32.xlu1 %v1571_v2, %s1690_s0 }
  0x25   :  { %158 = vrot.lane.b32.xlu0 %v1570_v1, %s1690_s0  ;;  %198 = vrot.lane.b32.xlu1 %v1568_v0, %s1691_s13 }
  0x29   :  { %200 = vrot.lane.b32.xlu0 %v1571_v2, %s1691_s13  ;;  %196 = vrot.lane.b32.xlu1 %v1570_v1, %s1691_s13 }
  0x2d   :  { %236 = vrot.lane.b32.xlu0 %v1568_v0, %s1692_s14  ;;  %238 = vrot.lane.b32.xlu1 %v1571_v2, %s1692_s14 }
  0x31   :  { %234 = vrot.lane.b32.xlu0 %v1570_v1, %s1692_s14  ;;  %274 = vrot.lane.b32.xlu1 %v1568_v0, %s1693_s15 }
  0x35   :  { %276 = vrot.lane.b32.xlu0 %v1571_v2, %s1693_s15  ;;  %272 = vrot.lane.b32.xlu1 %v1570_v1, %s1693_s15 }
  0x39   :  { %312 = vrot.lane.b32.xlu0 %v1568_v0, %s1694_s16  ;;  %314 = vrot.lane.b32.xlu1 %v1571_v2, %s1694_s16 }
  0x3d   :  { %310 = vrot.lane.b32.xlu0 %v1570_v1, %s1694_s16  ;;  %350 = vrot.lane.b32.xlu1 %v1568_v0, %s1695_s19 }
  0x41   :  { %352 = vrot.lane.b32.xlu0 %v1571_v2, %s1695_s19  ;;  %348 = vrot.lane.b32.xlu1 %v1570_v1, %s1695_s19 }
  0x45   :  { %410 = vrot.lane.b32.xlu0 %v1755_v3, %s1688_s11  ;;  %412 = vrot.lane.b32.xlu1 %v1789_v6, %s1688_s11 }
  0x49   :  { %88 = vrot.lane.b32.xlu0 %v1576_v7, %s1688_s11  ;;  %414 = vrot.lane.b32.xlu1 %v1577_v8, %s1688_s11 }
  0x4d   :  { %416 = vrot.lane.b32.xlu0 %v1579_v9, %s1688_s11  ;;  %447 = vrot.lane.b32.xlu1 %v1755_v3, %s1689_s12 }
  0x51   :  { %449 = vrot.lane.b32.xlu0 %v1789_v6, %s1689_s12  ;;  %126 = vrot.lane.b32.xlu1 %v1576_v7, %s1689_s12 }
  0x55   :  { %451 = vrot.lane.b32.xlu0 %v1577_v8, %s1689_s12  ;;  %453 = vrot.lane.b32.xlu1 %v1579_v9, %s1689_s12 }
  0x59   :  { %484 = vrot.lane.b32.xlu0 %v1755_v3, %s1690_s0  ;;  %486 = vrot.lane.b32.xlu1 %v1789_v6, %s1690_s0 }
  0x5d   :  { %164 = vrot.lane.b32.xlu0 %v1576_v7, %s1690_s0  ;;  %488 = vrot.lane.b32.xlu1 %v1577_v8, %s1690_s0 }
  0x61   :  { %490 = vrot.lane.b32.xlu0 %v1579_v9, %s1690_s0  ;;  %521 = vrot.lane.b32.xlu1 %v1755_v3, %s1691_s13 }
  0x65   :  { %523 = vrot.lane.b32.xlu0 %v1789_v6, %s1691_s13  ;;  %202 = vrot.lane.b32.xlu1 %v1576_v7, %s1691_s13 }
  0x69   :  { %525 = vrot.lane.b32.xlu0 %v1577_v8, %s1691_s13  ;;  %527 = vrot.lane.b32.xlu1 %v1579_v9, %s1691_s13 }
  0x6d   :  { %558 = vrot.lane.b32.xlu0 %v1755_v3, %s1692_s14  ;;  %560 = vrot.lane.b32.xlu1 %v1789_v6, %s1692_s14 }
  0x71   :  { %240 = vrot.lane.b32.xlu0 %v1576_v7, %s1692_s14  ;;  %562 = vrot.lane.b32.xlu1 %v1577_v8, %s1692_s14 }
  0x75   :  { %564 = vrot.lane.b32.xlu0 %v1579_v9, %s1692_s14  ;;  %595 = vrot.lane.b32.xlu1 %v1755_v3, %s1693_s15 }
  0x79   :  { %597 = vrot.lane.b32.xlu0 %v1789_v6, %s1693_s15  ;;  %278 = vrot.lane.b32.xlu1 %v1576_v7, %s1693_s15 }
  0x7d   :  { %599 = vrot.lane.b32.xlu0 %v1577_v8, %s1693_s15  ;;  %601 = vrot.lane.b32.xlu1 %v1579_v9, %s1693_s15 }
  0x81   :  { %632 = vrot.lane.b32.xlu0 %v1755_v3, %s1694_s16  ;;  %634 = vrot.lane.b32.xlu1 %v1789_v6, %s1694_s16 }
  0x85   :  { %316 = vrot.lane.b32.xlu0 %v1576_v7, %s1694_s16  ;;  %636 = vrot.lane.b32.xlu1 %v1577_v8, %s1694_s16 }
  0x87   :  { %v85_v10 = vpop.permute.xlu0 %84  ;;  %v83_v11 = vpop.permute.xlu1 %82 }
  0x88   :  { %v91_v15 = vsel %vm90_vm1, %v83_v11, %v85_v10 }
  0x89   :  { %638 = vrot.lane.b32.xlu0 %v1579_v9, %s1694_s16  ;;  %669 = vrot.lane.b32.xlu1 %v1755_v3, %s1695_s19 }
  0x8b   :  { %v1842_v12 = vpop.permute.xlu0 %86  ;;  %v123_v13 = vpop.permute.xlu1 %122 }
  0x8c   :  { %v92_v14 = vsel %vm90_vm1, %v85_v10, %v1842_v12 }
  0x8d   :  { %671 = vrot.lane.b32.xlu0 %v1789_v6, %s1695_s19  ;;  %757 = vmatprep.subr.bf16.mxu0 %v92_v14 }
  0x8e   :  { %354 = vrot.lane.b32.xlu1 %v1576_v7, %s1695_s19  ;;  %758 = vmatpush1.bf16.msra.mxu0 %v91_v15 }
  0x8f   :  { %v1850_v16 = vpop.permute.xlu0 %124  ;;  %v121_v17 = vpop.permute.xlu1 %120 }
  0x90   :  { %v130_v18 = vsel %vm128_vm2, %v123_v13, %v1850_v16  ;;  %v129_v19 = vsel %vm128_vm2, %v121_v17, %v123_v13 }
  0x91   :  { %673 = vrot.lane.b32.xlu0 %v1577_v8, %s1695_s19  ;;  %759 = vmatprep.subr.bf16.mxu0 %v130_v18 }
  0x92   :  { %675 = vrot.lane.b32.xlu1 %v1579_v9, %s1695_s19  ;;  %760 = vmatpush1.bf16.msra.mxu0 %v129_v19 }
  0x93   :  { %v161_v20 = vpop.permute.xlu0 %160  ;;  %v1857_v21 = vpop.permute.xlu1 %162 }
  0x94   :  { %v168_v22 = vsel %vm166_vm3, %v161_v20, %v1857_v21 }
  0x95   :  { %761 = vmatprep.subr.bf16.mxu0 %v168_v22 }
  0x97   :  { %v159_v23 = vpop.permute.xlu0 %158  ;;  %v199_v24 = vpop.permute.xlu1 %198 }
  0x98   :  { %v167_v25 = vsel %vm166_vm3, %v159_v23, %v161_v20 }
  0x99   :  { %762 = vmatpush1.bf16.msra.mxu0 %v167_v25 }
  0x9b   :  { %v1862_v26 = vpop.permute.xlu0 %200  ;;  %v197_v27 = vpop.permute.xlu1 %196 }
  0x9c   :  { %v206_v28 = vsel %vm204_vm4, %v199_v24, %v1862_v26  ;;  %v205_v29 = vsel %vm204_vm4, %v197_v27, %v199_v24 }
  0x9d   :  { %763 = vmatprep.subr.bf16.mxu0 %v206_v28 }
  0x9e   :  { %764 = vmatpush1.bf16.msra.mxu0 %v205_v29 }
  0x9f   :  { %v237_v30 = vpop.permute.xlu0 %236  ;;  %v1867_v31 = vpop.permute.xlu1 %238 }
  0xa0   :  { %v244_v32 = vsel %vm242_vm5, %v237_v30, %v1867_v31 }
  0xa1   :  { %765 = vmatprep.subr.bf16.mxu0 %v244_v32 }
  0xa3   :  { %v235_v33 = vpop.permute.xlu0 %234  ;;  %v275_v34 = vpop.permute.xlu1 %274 }
  0xa4   :  { %v243_v35 = vsel %vm242_vm5, %v235_v33, %v237_v30 }
  0xa5   :  { %766 = vmatpush1.bf16.msra.mxu0 %v243_v35 }
  0xa7   :  { %v1872_v36 = vpop.permute.xlu0 %276  ;;  %v273_v37 = vpop.permute.xlu1 %272 }
  0xa8   :  { %v282_v38 = vsel %vm280_vm6, %v275_v34, %v1872_v36  ;;  %v281_v39 = vsel %vm280_vm6, %v273_v37, %v275_v34 }
  0xa9   :  { %767 = vmatprep.subr.bf16.mxu0 %v282_v38 }
  0xaa   :  { %768 = vmatpush1.bf16.msra.mxu0 %v281_v39 }
  0xab   :  { %v313_v40 = vpop.permute.xlu0 %312  ;;  %v1877_v41 = vpop.permute.xlu1 %314 }
  0xac   :  { %v320_v42 = vsel %vm318_vm7, %v313_v40, %v1877_v41 }
  0xad   :  { %769 = vmatprep.subr.bf16.mxu0 %v320_v42 }
  0xaf   :  { %v311_v43 = vpop.permute.xlu0 %310  ;;  %v351_v44 = vpop.permute.xlu1 %350 }
  0xb0   :  { %v319_v45 = vsel %vm318_vm7, %v311_v43, %v313_v40 }
  0xb1   :  { %770 = vmatpush1.bf16.msra.mxu0 %v319_v45 }
  0xb3   :  { %v1882_v46 = vpop.permute.xlu0 %352  ;;  %v349_v48 = vpop.permute.xlu1 %348 }
  0xb4   :  { %v358_v49 = vsel %vm356_vm8, %v351_v44, %v1882_v46  ;;  %v357_v50 = vsel %vm356_vm8, %v349_v48, %v351_v44 }
  0xb5   :  { %771 = vmatprep.subr.bf16.mxu0 %v358_v49 }
  0xb6   :  { %772 = vmatpush1.bf16.msra.mxu0 %v357_v50 }
  0xb7   :  { %v411_v52 = vpop.permute.xlu0 %410  ;;  %841 = vmatprep.subr.bf16.mxu0 %v1583_v47  ;;  %v413_v53 = vpop.permute.xlu1 %412 }
  0xb8   :  { %v418_v54 = vsel %vm90_vm1, %v411_v52, %v413_v53 }
  0xb9   :  { %788 = vmatmul.mubr.bf16.vlgmr.msra.gmra.mrb[0].mxu0 %v1890_v51  ;;  %800 = vmatprep.subr.bf16.mxu1 %v418_v54 }
  0xba   :  { %842 = vmatpush1.bf16.msra.mxu0 %v1789_v6  ;;  %1492 = vmatprep.mubr.msk.bf16.mxu0 %vm751_vm0, %v1779_v5 }
  0xbb   :  { %v89_v55 = vpop.permute.xlu0 %88  ;;  %v415_v56 = vpop.permute.xlu1 %414 }
  0xbc   :  { %v93_v57 = vsel %vm90_vm1, %v1842_v12, %v89_v55  ;;  %v419_v61 = vsel %vm90_vm1, %v413_v53, %v415_v56 }
  0xbd   :  { %801 = vmatpush1.bf16.msra.mxu1 %v93_v57 }
  0xbf   :  { %v417_v58 = vpop.permute.xlu0 %416  ;;  %v448_v59 = vpop.permute.xlu1 %447 }
  0xc0   :  { %v420_v60 = vsel %vm90_vm1, %v415_v56, %v417_v58 }
  0xc1   :  { %843 = vmatprep.subr.bf16.mxu0 %v420_v60 }
  0xc2   :  { %844 = vmatpush1.bf16.msra.mxu0 %v419_v61 }
  0xc3   :  { %v450_v62 = vpop.permute.xlu0 %449  ;;  %v127_v63 = vpop.permute.xlu1 %126 }
  0xc4   :  { %v455_v0 = vsel %vm128_vm2, %v448_v59, %v450_v62  ;;  %v131_v1 = vsel %vm128_vm2, %v1850_v16, %v127_v63  ;;  %v888_v63 = vlaneseq }
  0xc5   :  { %802 = vmatprep.subr.bf16.mxu1 %v455_v0 }
  0xc6   :  { %803 = vmatpush1.bf16.msra.mxu1 %v131_v1  ;;  %v889_v0 = vshrl.u32 %v888_v63, 7 }
  0xc7   :  { %v452_v2 = vpop.permute.xlu0 %451  ;;  %v454_v4 = vpop.permute.xlu1 %453 }
  0xc8   :  { %v456_v3 = vsel %vm128_vm2, %v450_v62, %v452_v2  ;;  %v457_v5 = vsel %vm128_vm2, %v452_v2, %v454_v4  ;;  %v1696_v62 = vmov 3   ;;  %v890_v1 = vsub.s32 0, %v889_v0 }
  0xc9   :  { %845 = vmatprep.subr.bf16.mxu0 %v457_v5  ;;  %1548 = vset.pattern.permute.xlu1 %v1696_v62  ;;  %v894_v2 = vsub.s32 1, %v889_v0 }
  0xca   :  { %846 = vmatpush1.bf16.msra.mxu0 %v456_v3 }
  0xcb   :  { %v485_v6 = vpop.permute.xlu0 %484  ;;  %v487_v7 = vpop.permute.xlu1 %486 }
  0xcc   :  { %v492_v8 = vsel %vm166_vm3, %v485_v6, %v487_v7 }
  0xcd   :  { %804 = vmatprep.subr.bf16.mxu1 %v492_v8 }
  0xcf   :  { %v165_v9 = vpop.permute.xlu0 %164  ;;  %v489_v10 = vpop.permute.xlu1 %488 }
  0xd0   :  { %v169_v11 = vsel %vm166_vm3, %v1857_v21, %v165_v9  ;;  %v493_v15 = vsel %vm166_vm3, %v487_v7, %v489_v10 }
  0xd1   :  { %805 = vmatpush1.bf16.msra.mxu1 %v169_v11 }
  0xd3   :  { %v491_v12 = vpop.permute.xlu0 %490  ;;  %v522_v13 = vpop.permute.xlu1 %521 }
  0xd4   :  { %v494_v14 = vsel %vm166_vm3, %v489_v10, %v491_v12 }
  0xd5   :  { %847 = vmatprep.subr.bf16.mxu0 %v494_v14 }
  0xd6   :  { %848 = vmatpush1.bf16.msra.mxu0 %v493_v15 }
  0xd7   :  { %v524_v16 = vpop.permute.xlu0 %523  ;;  %v203_v17 = vpop.permute.xlu1 %202 }
  0xd8   :  { %v529_v18 = vsel %vm204_vm4, %v522_v13, %v524_v16  ;;  %v207_v19 = vsel %vm204_vm4, %v1862_v26, %v203_v17 }
  0xd9   :  { %806 = vmatprep.subr.bf16.mxu1 %v529_v18 }
  0xda   :  { %807 = vmatpush1.bf16.msra.mxu1 %v207_v19 }
  0xdb   :  { %v526_v20 = vpop.permute.xlu0 %525  ;;  %v528_v22 = vpop.permute.xlu1 %527 }
  0xdc   :  { %v530_v21 = vsel %vm204_vm4, %v524_v16, %v526_v20  ;;  %v531_v23 = vsel %vm204_vm4, %v526_v20, %v528_v22  ;;  %v898_v20 = vsub.s32 2, %v889_v0 }
  0xdd   :  { %849 = vmatprep.subr.bf16.mxu0 %v531_v23 }
  0xde   :  { %850 = vmatpush1.bf16.msra.mxu0 %v530_v21 }
  0xdf   :  { %v559_v24 = vpop.permute.xlu0 %558  ;;  %v561_v25 = vpop.permute.xlu1 %560 }
  0xe0   :  { %v566_v27 = vsel %vm242_vm5, %v559_v24, %v561_v25 }
  0xe1   :  { %808 = vmatprep.subr.bf16.mxu1 %v566_v27 }
  0xe3   :  { %v241_v28 = vpop.permute.xlu0 %240  ;;  %v563_v29 = vpop.permute.xlu1 %562 }
  0xe4   :  { %v245_v30 = vsel %vm242_vm5, %v1867_v31, %v241_v28  ;;  %v567_v34 = vsel %vm242_vm5, %v561_v25, %v563_v29 }
  0xe5   :  { %809 = vmatpush1.bf16.msra.mxu1 %v245_v30 }
  0xe7   :  { %v565_v26 = vpop.permute.xlu0 %564  ;;  %v596_v32 = vpop.permute.xlu1 %595 }
  0xe8   :  { %v568_v33 = vsel %vm242_vm5, %v563_v29, %v565_v26 }
  0xe9   :  { %851 = vmatprep.subr.bf16.mxu0 %v568_v33 }
  0xea   :  { %852 = vmatpush1.bf16.msra.mxu0 %v567_v34 }
  0xeb   :  { %v598_v35 = vpop.permute.xlu0 %597  ;;  %v279_v37 = vpop.permute.xlu1 %278 }
  0xec   :  { %v603_v38 = vsel %vm280_vm6, %v596_v32, %v598_v35  ;;  %v283_v39 = vsel %vm280_vm6, %v1872_v36, %v279_v37 }
  0xed   :  { %810 = vmatprep.subr.bf16.mxu1 %v603_v38 }
  0xee   :  { %811 = vmatpush1.bf16.msra.mxu1 %v283_v39 }
  0xef   :  { %v600_v40 = vpop.permute.xlu0 %599  ;;  %v602_v42 = vpop.permute.xlu1 %601 }
  0xf0   :  { %v604_v31 = vsel %vm280_vm6, %v598_v35, %v600_v40  ;;  %v605_v43 = vsel %vm280_vm6, %v600_v40, %v602_v42 }
  0xf1   :  { %853 = vmatprep.subr.bf16.mxu0 %v605_v43 }
  0xf2   :  { %854 = vmatpush1.bf16.msra.mxu0 %v604_v31 }
  0xf3   :  { %v633_v44 = vpop.permute.xlu0 %632  ;;  %v635_v45 = vpop.permute.xlu1 %634 }
  0xf4   :  { %v640_v47 = vsel %vm318_vm7, %v633_v44, %v635_v45 }
  0xf5   :  { %812 = vmatprep.subr.bf16.mxu1 %v640_v47 }
  0xf7   :  { %v317_v48 = vpop.permute.xlu0 %316  ;;  %v637_v49 = vpop.permute.xlu1 %636 }
  0xf8   :  { %v321_v50 = vsel %vm318_vm7, %v1877_v41, %v317_v48  ;;  %v641_v54 = vsel %vm318_vm7, %v635_v45, %v637_v49 }
  0xf9   :  { %813 = vmatpush1.bf16.msra.mxu1 %v321_v50 }
  0xfb   :  { %v639_v36 = vpop.permute.xlu0 %638  ;;  %v670_v52 = vpop.permute.xlu1 %669 }
  0xfc   :  { %v642_v53 = vsel %vm318_vm7, %v637_v49, %v639_v36 }
  0xfd   :  { %855 = vmatprep.subr.bf16.mxu0 %v642_v53 }
  0xfe   :  { %856 = vmatpush1.bf16.msra.mxu0 %v641_v54 }
  0xff   :  { %v672_v55 = vpop.permute.xlu0 %671 }
 0x100   :  { %v355_v56 = vpop.permute.xlu1 %354  ;;  %v677_v57 = vsel %vm356_vm8, %v670_v52, %v672_v55 }
 0x101   :  { %814 = vmatprep.subr.bf16.mxu1 %v677_v57  ;;  %v359_v58 = vsel %vm356_vm8, %v1882_v46, %v355_v56  ;;  %v886_v46 = vld [vmem:[%s2148_s5] sm:$0x7] }
 0x102   :  { %815 = vmatpush1.bf16.msra.mxu1 %v359_v58  ;;  %v891_v3 = vrot.slane %v886_v46, %v890_v1  ;;  %v895_v4 = vrot.slane %v886_v46, %v894_v2  ;;  %v899_v21 = vrot.slane %v886_v46, %v898_v20 }
 0x103   :  { %v674_v59 = vpop.permute.xlu0 %673 }
 0x104   :  { %v678_v41 = vsel %vm356_vm8, %v672_v55, %v674_v59  ;;  %v676_v60 = vpop.permute.xlu1 %675 }
 0x105   :  { %831 = vmatmul.mubr.bf16.vlgmr.msra.gmra.mrb[0].mxu1 %v1890_v51  ;;  %v679_v61 = vsel %vm356_vm8, %v674_v59, %v676_v60  ;;  %v1992_v60 = vld [vmem:[%s2145_s2] sm:$0xff] }
 0x106   :  { %857 = vmatprep.subr.bf16.mxu0 %v679_v61  ;;  %v1998_v61 = vld [vmem:[%s2145_s2 + $0x8] sm:$0xff]  ;;  %v931_v62 = vmul.f32 256.0, %v1992_v60  ;;  %v935_v1 = vmul.f32 2.0, %v1992_v60 }
 0x107   :  { %858 = vmatpush1.bf16.msra.mxu0 %v678_v41  ;;  %v932_v63 = vmul.f32 256.0, %v1998_v61 }
 0x10a   :  { %874 = vmatmul.mubr.bf16.vlgmr.msra.gmra.mrb[4].mxu0 %v1890_v51 }
 0x18c   :  { %v1941_v5 = vpop.f32.mrb[0].mxu0 }
 0x18d   :  { %v903_v6 = vmul.f32 %v891_v3, %v1941_v5  ;;  %v1944_v7 = vpop.f32.mrb[1].mxu0 }
 0x18e   :  { %v904_v51 = vmul.f32 %v895_v4, %v1944_v7  ;;  %v1947_v8 = vpop.f32.mrb[2].mxu0 }
 0x18f   :  { %v917_v9 = vmul.f32 %v903_v6, %v1941_v5  ;;  %v906_v10 = vmul.f32 %v891_v3, %v1947_v8  ;;  %v1951_v11 = vpop.f32.mrb[3].mxu0 }
 0x190   :  { %v918_v12 = vmul.f32 %v904_v51, %v1944_v7  ;;  %v907_v13 = vmul.f32 %v895_v4, %v1951_v11  ;;  %v909_v14 = vadd.f32 %v904_v51, %v903_v6  ;;  %v941_v6 = vmul.f32 %v1992_v60, %v1992_v60 }
 0x191   :  { %v920_v15 = vmul.f32 %v906_v10, %v1947_v8  ;;  %v942_v51 = vmul.f32 %v1998_v61, %v1998_v61 }
 0x192   :  { %v921_v16 = vmul.f32 %v907_v13, %v1951_v11  ;;  %v913_v17 = vadd.f32 %v907_v13, %v906_v10  ;;  %v923_v18 = vadd.f32 %v918_v12, %v917_v9  ;;  %v943_v13 = vmul.f32 256.0, %v941_v6 }
 0x194   :  { %v927_v19 = vadd.f32 %v921_v16, %v920_v15  ;;  %v944_v16 = vmul.f32 256.0, %v942_v51 }
 0x1d8   :  { %v1957_v22 = vpop.f32.mrb[0].mxu1 }
 0x1d9   :  { %v1959_v23 = vpop.f32.mrb[1].mxu1  ;;  %v905_v24 = vmul.f32 %v899_v21, %v1957_v22 }
 0x1da   :  { %v1962_v25 = vpop.f32.mrb[2].mxu1  ;;  %v947_v26 = vmul.f32 %v891_v3, %v1959_v23 }
 0x1db   :  { %v1964_v27 = vpop.f32.mrb[3].mxu1  ;;  %v910_v28 = vadd.f32 %v909_v14, %v905_v24  ;;  %v908_v29 = vmul.f32 %v899_v21, %v1962_v25  ;;  %v919_v30 = vmul.f32 %v905_v24, %v1957_v22 }
 0x1dc   :  { %v950_v32 = vmul.f32 %v891_v3, %v1964_v27  ;;  %v961_v43 = vmul.f32 %v947_v26, %v1959_v23  ;;  %v936_v3 = vmul.f32 2.0, %v1998_v61 }
 0x1dd   :  { %v1970_v33 = vpop.f32.mrb[4].mxu0  ;;  %911 = vadd.xlane.f32.xlu0 %v910_v28  ;;  %v914_v34 = vadd.f32 %v913_v17, %v908_v29  ;;  %v924_v35 = vadd.f32 %v923_v18, %v919_v30  ;;  %v922_v37 = vmul.f32 %v908_v29, %v1962_v25 }
 0x1de   :  { %v948_v38 = vmul.f32 %v895_v4, %v1970_v33  ;;  %v1974_v39 = vpop.f32.mrb[5].mxu0  ;;  %v964_v49 = vmul.f32 %v950_v32, %v1964_v27 }
 0x1df   :  { %v1976_v40 = vpop.f32.mrb[6].mxu0  ;;  %915 = vadd.xlane.f32.xlu1 %v914_v34  ;;  %v949_v31 = vmul.f32 %v899_v21, %v1974_v39  ;;  %v928_v42 = vadd.f32 %v927_v19, %v922_v37 }
 0x1e0   :  { %v962_v44 = vmul.f32 %v948_v38, %v1970_v33  ;;  %v951_v45 = vmul.f32 %v895_v4, %v1976_v40  ;;  %v1982_v47 = vpop.f32.mrb[7].mxu0  ;;  %v953_v48 = vadd.f32 %v948_v38, %v947_v26 }
 0x1e1   :  { %v952_v50 = vmul.f32 %v899_v21, %v1982_v47  ;;  %925 = vadd.xlane.f32.xlu0 %v924_v35  ;;  %v963_v36 = vmul.f32 %v949_v31, %v1974_v39 }
 0x1e2   :  { %v965_v52 = vmul.f32 %v951_v45, %v1976_v40  ;;  %v954_v53 = vadd.f32 %v953_v48, %v949_v31  ;;  %v967_v54 = vadd.f32 %v962_v44, %v961_v43  ;;  %v957_v55 = vadd.f32 %v951_v45, %v950_v32  ;;  %v1493_v32 = vld [vmem:[%s2147_s4] ss:$0 sm:$0xff]  ;;  %s1700_s4 = smov 3  }
 0x1e3   :  { %v966_v56 = vmul.f32 %v952_v50, %v1982_v47  ;;  %v1699_v43 = vmov 0.0  }
 0x1e4   :  { %955 = vadd.xlane.f32.xlu1 %v954_v53  ;;  %v968_v57 = vadd.f32 %v967_v54, %v963_v36  ;;  %v958_v58 = vadd.f32 %v957_v55, %v952_v50  ;;  %v971_v59 = vadd.f32 %v965_v52, %v964_v49 }
 0x1e5   :  { %929 = vadd.xlane.f32.xlu0 %v928_v42 }
 0x1e6   :  { %v972_v41 = vadd.f32 %v971_v59, %v966_v56 }
 0x1e8   :  { %969 = vadd.xlane.f32.xlu1 %v968_v57 }
 0x1e9   :  { %959 = vadd.xlane.f32.xlu0 %v958_v58 }
 0x1ed   :  { %973 = vadd.xlane.f32.xlu0 %v972_v41 }
 0x1f9   :  { %1019 = vperm.xlu1 %1548, %v1992_v60  }
 0x1fd   :  { %1024 = vperm.xlu1 %1548, %v1998_v61  }
 0x26a   :  { %v912_v0 = vpop.xlane.xlu0 %911 }
 0x26b   :  { %v933_v46 = vadd.f32 %v931_v62, %v912_v0  ;;  %v937_v10 = vmul.f32 %v935_v1, %v912_v0 }
 0x26c   :  { %v916_v2 = vpop.xlane.xlu1 %915 }
 0x26d   :  { %v934_v4 = vadd.f32 %v932_v63, %v916_v2  ;;  %v938_v12 = vmul.f32 %v936_v3, %v916_v2 }
 0x26e   :  { %v926_v9 = vpop.xlane.xlu0 %925 }
 0x26f   :  { %v939_v14 = vadd.f32 %v937_v10, %v926_v9 }
 0x271   :  { %v956_v15 = vpop.xlane.xlu1 %955  ;;  %v945_v19 = vadd.f32 %v943_v13, %v939_v14 }
 0x272   :  { %v930_v17 = vpop.xlane.xlu0 %929  ;;  %v975_v28 = vadd.f32 %v956_v15, %v931_v62  ;;  %v977_v29 = vmul.f32 %v956_v15, %v935_v1 }
 0x273   :  { %v940_v18 = vadd.f32 %v938_v12, %v930_v17 }
 0x275   :  { %v946_v20 = vadd.f32 %v944_v16, %v940_v18  ;;  %v970_v21 = vpop.xlane.xlu1 %969 }
 0x276   :  { %v960_v24 = vpop.xlane.xlu0 %959  ;;  %v979_v34 = vadd.f32 %v977_v29, %v970_v21  ;;  %v1144_v29 = vld [vmem:[%s2146_s3 + $0x8] sm:$0xff] }
 0x277   :  { %v976_v30 = vadd.f32 %v960_v24, %v932_v63  ;;  %v1549_v26 = vpack.i.bf16 %v946_v20, %v945_v19  ;;  %v978_v35 = vmul.f32 %v960_v24, %v936_v3 }
 0x278   :  { %v981_v45 = vadd.f32 %v979_v34, %v943_v13 }
 0x279   :  { %v1554_v37 = vpack.i.bf16 %v976_v30, %v975_v28  ;;  %1550 = vrot.lane.b32.xlu0 %v1549_v26, %s1697_s27  ;;  %v1020_v38 = vpop.permute.xlu1 %1019  ;;  %v1701_v28 = vmov 1   ;;  %v1143_v30 = vld [vmem:[%s2146_s3] sm:$0xff]  ;;  %v1505_v26 = vld [vmem:[%s2146_s3 + $0x18] sm:$0xff] }
 0x27a   :  { %v974_v31 = vpop.xlane.xlu0 %973  ;;  %vm1033_vm9 = vcmp.eq.f32.partialorder %v1020_v38, %v1493_v32  ;;  %1565 = vset.pattern.permute.xlu0 %v1701_v28  ;;  %1564 = vset.pattern.permute.xlu1 %v1701_v28 }
 0x27b   :  { %v980_v42 = vadd.f32 %v978_v35, %v974_v31  ;;  %1555 = vrot.lane.b32.xlu1 %v1554_v37, %s1698_s28  ;;  %v1494_v44 = vsel %vm1033_vm9, 1.0, %v1699_v43 }
 0x27c   :  { %1520 = vmatprep.mubr.msk.f32.mxu1 %vm751_vm0, %v1494_v44 }
 0x27d   :  { %v982_v48 = vadd.f32 %v980_v42, %v944_v16  ;;  %v1025_v49 = vpop.permute.xlu1 %1024 }
 0x27e   :  { %vm1034_vm10 = vcmp.eq.f32.partialorder %v1025_v49, %v1493_v32  ;;  %v1504_v32 = vld [vmem:[%s2146_s3 + $0x10] sm:$0xff]  ;;  %s1703_s3 = smov [#allocation6]  }
 0x27f   :  { %v1559_v50 = vpack.i.bf16 %v982_v48, %v981_v45  ;;  %v1495_v36 = vsel %vm1034_vm10, 1.0, %v1699_v43 }
 0x281   :  { %1560 = vrot.lane.b32.xlu0 %v1559_v50, %s1700_s4 }
 0x2eb   :  { %v1551_v52 = vpop.permute.xlu0 %1550 }
 0x2ec   :  { %v1553_v53 = vunpack.i.h.bf16 %v1551_v52  ;;  %v1552_v54 = vunpack.i.l.bf16 %v1551_v52 }
 0x2ed   :  { %v1556_v55 = vpop.permute.xlu1 %1555 }
 0x2ee   :  { %v1558_v56 = vunpack.i.h.bf16 %v1556_v55  ;;  %v1557_v57 = vunpack.i.l.bf16 %v1556_v55  ;;  %v1009_v58 = vsel %vm1007_vm11, %v934_v4, %v1553_v53  ;;  %v1008_v59 = vsel %vm1007_vm11, %v933_v46, %v1552_v54 }
 0x2f0   :  { %v1011_v0 = vsel %vm1010_vm12, %v1008_v59, %v1557_v57  ;;  %v1012_v1 = vsel %vm1010_vm12, %v1009_v58, %v1558_v56  ;;  %v1702_v56 = vmov 0  }
 0x2f3   :  { %v1561_v41 = vpop.permute.xlu0 %1560 }
 0x2f4   :  { %v1563_v62 = vunpack.i.h.bf16 %v1561_v41  ;;  %v1562_v63 = vunpack.i.l.bf16 %v1561_v41 }
 0x2f6   :  { %v1014_v2 = vsel %vm1013_vm13, %v1011_v0, %v1562_v63  ;;  %v1015_v3 = vsel %vm1013_vm13, %v1012_v1, %v1563_v62 }
 0x2f7   :  { %v1523_v6 = vpack.c.bf16 %v1015_v3, %v1014_v2 }
 0x2f9   :  { %1524 = vmatprep.subr.bf16.mxu1 %v1523_v6 }
 0x2fa   :  { %1526 = vmatpush3.bf16.msra.mxu1 %v1523_v6 }
 0x2fd   :  { %1521 = vmatmul.mubr.msk.f32.vlgmr.msra.gmra.mrb[4].mxu1 %vm751_vm0, %v1495_v36 }
 0x3d0   :  { %v1522_v51 = vpop.f32.mrb[4].mxu1 }
 0x3d1   :  { %v2015_v9 = vmul.f32 0.001953125, %v1522_v51  ;;  %v1111_v10 = vpop.f32.mrb[5].mxu1 }
 0x3d2   :  { %v2017_v4 = vmul.f32 0.001953125, %v1111_v10 }
 0x3d3   :  { %v1124_v46 = vmul.f32 %v2015_v9, %v2015_v9  ;;  %v1156_v59 = vsub.f32 %v1998_v61, %v2015_v9 }
 0x3d4   :  { %v1123_v12 = vmul.f32 %v2017_v4, %v2017_v4  ;;  %v1155_v62 = vsub.f32 %v1992_v60, %v2017_v4 }
 0x3d5   :  { %1129 = vrot.lane.b32.xlu0 %v1124_v46, %s1697_s27 }
 0x3d6   :  { %1127 = vrot.lane.b32.xlu1 %v1123_v12, %s1697_s27 }
 0x447   :  { %v1130_v13 = vpop.permute.xlu0 %1129 }
 0x448   :  { %v1134_v14 = vsub.f32 %v2015_v9, %v1130_v13  ;;  %v1128_v15 = vpop.permute.xlu1 %1127 }
 0x449   :  { %v1133_v16 = vsub.f32 %v2017_v4, %v1128_v15 }
 0x44a   :  { %v1136_v17 = vmax.f32 %v1134_v14, 0.0 }
 0x44b   :  { %v1135_v18 = vmax.f32 %v1133_v16, 0.0 }
 0x44c   :  { %v1138_v19 = vadd.f32 1e-05, %v1136_v17 }
 0x44d   :  { %v1137_v20 = vadd.f32 1e-05, %v1135_v18 }
 0x44e   :  { %1585 = vrsqrt.f32 %v1138_v19 }
 0x44f   :  { %1587 = vrsqrt.f32 %v1137_v20 }
 0x458   :  { %v1586_v21 = vpop.eup %1585 }
 0x459   :  { %v1588_v24 = vpop.eup %1587  ;;  %1269 = vrot.lane.b32.xlu0 %v1586_v21, %s1689_s12  ;;  %v1142_v34 = vmul.f32 %v1586_v21, %v1998_v61 }
 0x45a   :  { %1267 = vrot.lane.b32.xlu1 %v1588_v24, %s1689_s12  ;;  %v1141_v35 = vmul.f32 %v1588_v24, %v1992_v60 }
 0x45d   :  { %1292 = vrot.lane.b32.xlu0 %v2015_v9, %s1689_s12 }
 0x45e   :  { %1290 = vrot.lane.b32.xlu1 %v2017_v4, %s1689_s12 }
 0x461   :  { %1169 = vrot.lane.b32.xlu0 %v1998_v61, %s1689_s12 }
 0x462   :  { %1167 = vrot.lane.b32.xlu1 %v1992_v60, %s1689_s12 }
 0x465   :  { %1149 = vrot.lane.b32.xlu0 %v1144_v29, %s1697_s27 }
 0x466   :  { %1147 = vrot.lane.b32.xlu1 %v1143_v30, %s1697_s27 }
 0x469   :  { %1282 = vrot.lane.b32.xlu0 %v1505_v26, %s1697_s27 }
 0x46a   :  { %1280 = vrot.lane.b32.xlu1 %v1504_v32, %s1697_s27 }
 0x46d   :  { %1161 = vrot.lane.b32.xlu0 %v1142_v34, %s1688_s11 }
 0x46e   :  { %1159 = vrot.lane.b32.xlu1 %v1141_v35, %s1688_s11 }
 0x4cb   :  { %v1270_v37 = vpop.permute.xlu0 %1269 }
 0x4cc   :  { %v1274_v38 = vmul.f32 %v1270_v37, %v1998_v61  ;;  %v1268_v31 = vpop.permute.xlu1 %1267 }
 0x4cd   :  { %v1273_v42 = vmul.f32 %v1268_v31, %v1992_v60 }
 0x4ce   :  { %1302 = vrot.lane.b32.xlu0 %v1274_v38, %s1688_s11 }
 0x4cf   :  { %v1293_v43 = vpop.permute.xlu0 %1292  ;;  %1300 = vrot.lane.b32.xlu1 %v1273_v42, %s1688_s11 }
 0x4d0   :  { %v1291_v44 = vpop.permute.xlu1 %1290  ;;  %v1297_v1 = vsub.f32 %v1998_v61, %v1293_v43 }
 0x4d1   :  { %v1296_v3 = vsub.f32 %v1992_v60, %v1291_v44 }
 0x4d2   :  { %1179 = vrot.lane.b32.xlu0 %v1144_v29, %s1688_s11 }
 0x4d3   :  { %v1170_v45 = vpop.permute.xlu0 %1169  ;;  %1177 = vrot.lane.b32.xlu1 %v1143_v30, %s1688_s11 }
 0x4d4   :  { %v1168_v48 = vpop.permute.xlu1 %1167 }
 0x4d6   :  { %1314 = vrot.lane.b32.xlu0 %v1505_v26, %s1688_s11 }
 0x4d7   :  { %v1150_v49 = vpop.permute.xlu0 %1149  ;;  %1312 = vrot.lane.b32.xlu1 %v1504_v32, %s1688_s11  ;;  %s1406_s11 = sshll.u32 %s1703_s3, 4  ;;  %s1407_s11 = int_to_ptr.vmem [resolvable:$true] %s1406_s11 }
 0x4d8   :  { %v1154_v50 = vmul.f32 %v1150_v49, %v1142_v34  ;;  %v1148_v36 = vpop.permute.xlu1 %1147  ;;  %s1659_s12 = scalar_lea.vmem %s1407_s11, 1536  ;;  %p1664_p9 = scmp.lt.s32.totalorder %s1407_s11, %s1407_s11 }
 0x4d9   :  { %v1153_v52 = vmul.f32 %v1148_v36, %v1141_v35  ;;  %p1660_p8 = scmp.ne.s32.totalorder %s1407_s11, %s1659_s12  ;;  %p1665_p10 = scmp.lt.s32.totalorder %s1659_s12, %s1659_s12 }
 0x4da   :  { %1192 = vperm.xlu0 %1565, %v1154_v50  }
 0x4db   :  { %v1283_v53 = vpop.permute.xlu0 %1282  ;;  %1187 = vperm.xlu1 %1564, %v1153_v52   ;;  %p1666_p11 = por %p1665_p10, %p1664_p9 }
 0x4dc   :  { %v1287_v54 = vmul.f32 %v1283_v53, %v1274_v38  ;;  %v1281_v55 = vpop.permute.xlu1 %1280 }
 0x4dd   :  { %v1286_v57 = vmul.f32 %v1281_v55, %v1273_v42  ;;  %p1667_p12 = pnand %p1666_p11, %p1660_p8 }
 0x4de   :  { %1567 = vset.pattern.permute.xlu0 %v1702_v56 }
 0x4df   :  { %1327 = vperm.xlu1 %1564, %v1287_v54   ;;  %v1162_v58 = vpop.permute.xlu0 %1161 }
 0x4e0   :  { %v1160_v41 = vpop.permute.xlu1 %1159  ;;  %v1166_v63 = vmul.f32 %v1162_v58, %v1156_v59 }
 0x4e1   :  { %v1165_v0 = vmul.f32 %v1160_v41, %v1155_v62 }
 0x4e2   :  { %v1174_v2 = vadd.f32 %v1170_v45, %v1166_v63 }
 0x4e3   :  { %1322 = vperm.xlu1 %1564, %v1286_v57   ;;  %v1173_v6 = vadd.f32 %v1168_v48, %v1165_v0 }
 0x4e4   :  { %v1176_v14 = vmul.f32 %v1174_v2, %v1144_v29 }
 0x4e5   :  { %v1175_v16 = vmul.f32 %v1173_v6, %v1143_v30 }
 0x4e7   :  { %1566 = vset.pattern.permute.xlu1 %v1702_v56 }
 0x540   :  { %v1303_v51 = vpop.permute.xlu0 %1302 }
 0x541   :  { %v1307_v10 = vmul.f32 %v1303_v51, %v1297_v1  ;;  %v1301_v46 = vpop.permute.xlu1 %1300 }
 0x542   :  { %v1306_v12 = vmul.f32 %v1301_v46, %v1296_v3 }
 0x543   :  { %v1309_v13 = vadd.f32 %v1307_v10, %v1170_v45 }
 0x544   :  { %v1308_v15 = vadd.f32 %v1306_v12, %v1168_v48  ;;  %v1180_v9 = vpop.permute.xlu0 %1179 }
 0x545   :  { %v1184_v17 = vadd.f32 %v1180_v9, %v1176_v14  ;;  %v1178_v18 = vpop.permute.xlu1 %1177  ;;  %v1311_v19 = vmul.f32 %v1505_v26, %v1309_v13 }
 0x546   :  { %v1183_v4 = vadd.f32 %v1178_v18, %v1175_v16  ;;  %v1310_v61 = vmul.f32 %v1504_v32, %v1308_v15 }
 0x547   :  { %1208 = vperm.xlu1 %1566, %v1184_v17  }
 0x548   :  { %v1315_v20 = vpop.permute.xlu0 %1314  ;;  %1203 = vperm.xlu0 %1567, %v1183_v4  }
 0x549   :  { %v1319_v21 = vadd.f32 %v1315_v20, %v1311_v19  ;;  %v1313_v60 = vpop.permute.xlu1 %1312 }
 0x54a   :  { %v1318_v24 = vadd.f32 %v1313_v60, %v1310_v61 }
 0x54c   :  { %1343 = vperm.xlu0 %1567, %v1319_v21   ;;  %1338 = vperm.xlu1 %1566, %v1318_v24  }
 0x559   :  { %v1193_v35 = vpop.permute.xlu0 %1192 }
 0x55a   :  { %v1188_v28 = vpop.permute.xlu1 %1187  ;;  %v1198_v37 = vmul.f32 %v1193_v35, %v1947_v8  ;;  %v1199_v30 = vmul.f32 %v1193_v35, %v1951_v11  ;;  %v1200_v38 = vmul.f32 %v1193_v35, %v1962_v25 }
 0x55b   :  { %v1195_v26 = vmul.f32 %v1188_v28, %v1941_v5  ;;  %v1196_v31 = vmul.f32 %v1188_v28, %v1944_v7  ;;  %v1197_v32 = vmul.f32 %v1188_v28, %v1957_v22 }
 0x55e   :  { %v1328_v34 = vpop.permute.xlu1 %1327 }
 0x55f   :  { %v1333_v8 = vmul.f32 %v1328_v34, %v1964_v27  ;;  %v1334_v5 = vmul.f32 %v1328_v34, %v1976_v40  ;;  %v1335_v36 = vmul.f32 %v1328_v34, %v1982_v47 }
 0x562   :  { %v1323_v29 = vpop.permute.xlu1 %1322 }
 0x563   :  { %v1330_v52 = vmul.f32 %v1323_v29, %v1959_v23  ;;  %v1331_v27 = vmul.f32 %v1323_v29, %v1970_v33  ;;  %v1332_v54 = vmul.f32 %v1323_v29, %v1974_v39 }
 0x5c6   :  { %v1209_v42 = vpop.permute.xlu1 %1208 }
 0x5c7   :  { %v2077_v43 = vadd.f32 %v1209_v42, %v1198_v37  ;;  %v2079_v44 = vadd.f32 %v1209_v42, %v1199_v30  ;;  %v2081_v45 = vadd.f32 %v1209_v42, %v1200_v38  ;;  %v1204_v48 = vpop.permute.xlu0 %1203 }
 0x5c8   :  { %v2084_v49 = vadd.f32 %v1204_v48, %v1195_v26  ;;  %v2086_v11 = vadd.f32 %v1204_v48, %v1196_v31  ;;  %v2088_v25 = vadd.f32 %v1204_v48, %v1197_v32 }
 0x5c9   :  { %v1501_v7 = vmul.f32 -1.442695, %v2077_v43  ;;  %v1502_v22 = vmul.f32 -1.442695, %v2079_v44  ;;  %v1503_v50 = vmul.f32 -1.442695, %v2081_v45 }
 0x5ca   :  { %v1498_v53 = vmul.f32 -1.442695, %v2084_v49  ;;  %v1499_v55 = vmul.f32 -1.442695, %v2086_v11  ;;  %v1500_v40 = vmul.f32 -1.442695, %v2088_v25 }
 0x5cb   :  { %1589 = vpow2.f32 %v1501_v7  ;;  %v1344_v56 = vpop.permute.xlu0 %1343  ;;  %v1339_v57 = vpop.permute.xlu1 %1338 }
 0x5cc   :  { %1591 = vpow2.f32 %v1502_v22  ;;  %v2101_v58 = vadd.f32 %v1344_v56, %v1333_v8  ;;  %v2103_v59 = vadd.f32 %v1344_v56, %v1334_v5  ;;  %v2105_v47 = vadd.f32 %v1344_v56, %v1335_v36 }
 0x5cd   :  { %1593 = vpow2.f32 %v1503_v50  ;;  %v2107_v23 = vadd.f32 %v1339_v57, %v1330_v52  ;;  %v2109_v33 = vadd.f32 %v1339_v57, %v1331_v27  ;;  %v2113_v62 = vadd.f32 %v1339_v57, %v1332_v54 }
 0x5ce   :  { %1595 = vpow2.f32 %v1498_v53  ;;  %v1509_v39 = vmul.f32 -1.442695, %v2101_v58  ;;  %v1510_v41 = vmul.f32 -1.442695, %v2103_v59  ;;  %v1511_v63 = vmul.f32 -1.442695, %v2105_v47 }
 0x5cf   :  { %1597 = vpow2.f32 %v1499_v55  ;;  %v1506_v0 = vmul.f32 -1.442695, %v2107_v23  ;;  %v1507_v1 = vmul.f32 -1.442695, %v2109_v33  ;;  %v1508_v2 = vmul.f32 -1.442695, %v2113_v62 }
 0x5d0   :  { %1599 = vpow2.f32 %v1500_v40 }
 0x5d1   :  { %1601 = vpow2.f32 %v1509_v39 }
 0x5d2   :  { %1603 = vpow2.f32 %v1510_v41 }
 0x5d3   :  { %1605 = vpow2.f32 %v1511_v63 }
 0x5d4   :  { %1607 = vpow2.f32 %v1506_v0 }
 0x5d5   :  { %v1590_v3 = vpop.eup %1589  ;;  %1609 = vpow2.f32 %v1507_v1 }
 0x5d6   :  { %v1592_v6 = vpop.eup %1591  ;;  %v1238_v51 = vadd.f32 1.0, %v1590_v3  ;;  %1611 = vpow2.f32 %v1508_v2 }
 0x5d7   :  { %v1594_v10 = vpop.eup %1593  ;;  %v1239_v46 = vadd.f32 1.0, %v1592_v6 }
 0x5d8   :  { %v1596_v12 = vpop.eup %1595  ;;  %v1240_v13 = vadd.f32 1.0, %v1594_v10  ;;  %1613 = vrcp.f32 %v1238_v51 }
 0x5d9   :  { %v1598_v14 = vpop.eup %1597  ;;  %1615 = vrcp.f32 %v1239_v46  ;;  %v1235_v15 = vadd.f32 1.0, %v1596_v12 }
 0x5da   :  { %v1600_v9 = vpop.eup %1599  ;;  %1617 = vrcp.f32 %v1240_v13  ;;  %v1236_v16 = vadd.f32 1.0, %v1598_v14 }
 0x5db   :  { %v1602_v17 = vpop.eup %1601  ;;  %v1237_v18 = vadd.f32 1.0, %v1600_v9  ;;  %1619 = vrcp.f32 %v1235_v15 }
 0x5dc   :  { %v1604_v4 = vpop.eup %1603  ;;  %1621 = vrcp.f32 %v1236_v16  ;;  %v1373_v19 = vadd.f32 1.0, %v1602_v17 }
 0x5dd   :  { %v1606_v20 = vpop.eup %1605  ;;  %1623 = vrcp.f32 %v1237_v18  ;;  %v1374_v61 = vadd.f32 1.0, %v1604_v4 }
 0x5de   :  { %v1608_v21 = vpop.eup %1607  ;;  %v1375_v60 = vadd.f32 1.0, %v1606_v20  ;;  %1625 = vrcp.f32 %v1373_v19 }
 0x5df   :  { %v1610_v24 = vpop.eup %1609  ;;  %1627 = vrcp.f32 %v1374_v61  ;;  %v1370_v28 = vadd.f32 1.0, %v1608_v21 }
 0x5e0   :  { %v1612_v34 = vpop.eup %1611  ;;  %1629 = vrcp.f32 %v1375_v60  ;;  %v1371_v35 = vadd.f32 1.0, %v1610_v24 }
 0x5e1   :  { %v1372_v29 = vadd.f32 1.0, %v1612_v34  ;;  %1631 = vrcp.f32 %v1370_v28 }
 0x5e2   :  { %v1614_v37 = vpop.eup %1613  ;;  %1633 = vrcp.f32 %v1371_v35 }
 0x5e3   :  { %v1616_v30 = vpop.eup %1615  ;;  %v1256_v38 = vmul.f32 %v1614_v37, %v2077_v43  ;;  %1635 = vrcp.f32 %v1372_v29 }
 0x5e4   :  { %v1618_v26 = vpop.eup %1617  ;;  %v1257_v31 = vmul.f32 %v1616_v30, %v2079_v44 }
 0x5e5   :  { %v1620_v32 = vpop.eup %1619  ;;  %v1258_v42 = vmul.f32 %v1618_v26, %v2081_v45  ;;  %1262 = vst [vmem:[#allocation6 + $0x18] sm:$0xff] %v1256_v38 }
 0x5e6   :  { %v1622_v48 = vpop.eup %1621  ;;  %1263 = vst [vmem:[#allocation6 + $0x20] sm:$0xff] %v1257_v31  ;;  %v1253_v8 = vmul.f32 %v1620_v32, %v2084_v49 }
 0x5e7   :  { %v1624_v5 = vpop.eup %1623  ;;  %1264 = vst [vmem:[#allocation6 + $0x28] sm:$0xff] %v1258_v42  ;;  %v1254_v7 = vmul.f32 %v1622_v48, %v2086_v11 }
 0x5e8   :  { %v1626_v22 = vpop.eup %1625  ;;  %v1255_v50 = vmul.f32 %v1624_v5, %v2088_v25  ;;  %1259 = vst [vmem:[#allocation6] sm:$0xff] %v1253_v8 }
 0x5e9   :  { %v1628_v43 = vpop.eup %1627  ;;  %1260 = vst [vmem:[#allocation6 + $0x8] sm:$0xff] %v1254_v7  ;;  %v1391_v44 = vmul.f32 %v1626_v22, %v2101_v58 }
 0x5ea   :  { %v1630_v36 = vpop.eup %1629  ;;  %1261 = vst [vmem:[#allocation6 + $0x10] sm:$0xff] %v1255_v50  ;;  %v1392_v45 = vmul.f32 %v1628_v43, %v2103_v59 }
 0x5eb   :  { %v1632_v52 = vpop.eup %1631  ;;  %v1393_v49 = vmul.f32 %v1630_v36, %v2105_v47  ;;  %1398 = vst [vmem:[#allocation6 + $0x48] sm:$0xff] %v1391_v44 }
 0x5ec   :  { %v1634_v27 = vpop.eup %1633  ;;  %1399 = vst [vmem:[#allocation6 + $0x50] sm:$0xff] %v1392_v45  ;;  %v1388_v11 = vmul.f32 %v1632_v52, %v2107_v23 }
 0x5ed   :  { %v1636_v25 = vpop.eup %1635  ;;  %1400 = vst [vmem:[#allocation6 + $0x58] sm:$0xff] %v1393_v49  ;;  %v1389_v53 = vmul.f32 %v1634_v27, %v2109_v33 }
 0x5ee   :  { %v1390_v54 = vmul.f32 %v1636_v25, %v2113_v62  ;;  %1395 = vst [vmem:[#allocation6 + $0x30] sm:$0xff] %v1388_v11 }
 0x5ef   :  { %1396 = vst [vmem:[#allocation6 + $0x38] sm:$0xff] %v1389_v53 }
 0x5f0   :  { %1397 = vst [vmem:[#allocation6 + $0x40] sm:$0xff] %v1390_v54 }
 0x5f1   :  { %1670 = shalt.err (!%p1667_p12)
}
 0x5f2   :  { %s1671_s16 = scalar_lea.hbm %s2149_s6, 1536 }
 0x5f3   :  { %p1672_p13 = scmp.ne.s32.totalorder %s2149_s6, %s1671_s16  ;;  %p1675_p0 = scmp.lt.u32.totalorder %s1671_s16, %s2149_s6 }
 0x5f5   :  { %p1677_p1 = pnand %p1675_p0, %p1672_p13 }
 0x5f7   :  { %1680 = shalt.err (!%p1677_p1)
}
 0x5f8   :  { %s1704_s21 = smov 384   ;;  %s1705_s1 = smov 24  }
 0x5f9   :  { %1412 = dma.vmem_to_hbm [thread:$0]  %s1407_s11, 1536, %s2149_s6, [#allocation5], %s1704_s21, %s1704_s21, %s1705_s1  }
 0x5fa   :  { %1683 = dma.done.wait [#allocation5], 1536  }
 0x5fb   :  { %1684 = vsyncadd [#allocation5], 4294965760 }
 0x5fc   :  { %1416 = vsyncpa [#allocation4], 1 }
 0x5fd   :  { %1417 = vsyncpa [#allocation5], 1 }

</bundles_post_ra>
